<compile_context>
chip_gen: v7x
topology: tpu7x:2x2x1
jax: 0.10.0
libtpu: 0.0.40
codegen_flags: <defaults>
</compile_context>

<pallas_src>
import jax
import jax.numpy as jnp
from jax.experimental import pallas as pl
from jax.experimental.pallas import tpu as pltpu


# ----------------------------- fused Pallas kernel -----------------------------

def adaatt_core_kernel(
    # tensors
    xt_ref, fc_ref, att_ref, p_att_ref, h_prev_ref, c_prev_ref,
    # fused AdaAtt_lstm weights (num_layers=1, use_maxout=False)
    w_in_ref, b_in_ref,
    # fused AdaAtt_attention weights
    w_frho_ref, b_frho_ref, w_embed_ref, b_embed_ref,
    w_alpha_ref, w_att2h_ref, b_att2h_ref,
    # outputs
    out_ref, h_out_ref, c_out_ref):

    R = h_prev_ref.shape[1]
    E = xt_ref.shape[1]
    A = w_alpha_ref.shape[1]
    wdt = w_in_ref.dtype                       # bfloat16 (MXU inputs)

    h_prev = h_prev_ref[...]
    c_prev = c_prev_ref[...]

    # --------------- AdaAtt_lstm (num_layers=1, use_maxout=False) ---------------
    # TODO(synk): multi-layer AdaAtt_lstm (num_layers > 1) not unrolled here.
    # Single fused MXU push: [xt | fc | h_prev] [B, E+2R] x [E+2R, 4R+R]
    # columns 0:4R -> LSTM gates, columns 4R:5R -> sentinel pre-activation n5.
    x_cat = jnp.concatenate([xt_ref[...], fc_ref[...], h_prev], axis=1).astype(wdt)
    gates_n5 = jnp.dot(x_cat, w_in_ref[...],
                       preferred_element_type=jnp.float32) + b_in_ref[...]   # [B, 5R]

    # With R % 128 == 0 every slice below is a full set of 128-lane vregs.
    in_gate      = jax.nn.sigmoid(gates_n5[:, 0:R])
    forget_gate  = jax.nn.sigmoid(gates_n5[:, R:2 * R])
    out_gate     = jax.nn.sigmoid(gates_n5[:, 2 * R:3 * R])
    in_transform = jnp.tanh(gates_n5[:, 3 * R:4 * R])
    n5           = gates_n5[:, 4 * R:5 * R]

    next_c = forget_gate * c_prev + in_gate * in_transform
    tanh_next_c = jnp.tanh(next_c)
    next_h = out_gate * tanh_next_c                                   # top_h
    fake_region = jax.nn.sigmoid(n5) * tanh_next_c                    # sentinel [B, R]

    h_out_ref[...] = next_h
    c_out_ref[...] = next_c

    # ----------------------------- AdaAtt_attention -----------------------------
    # TODO(synk): dropout layers are identity (inference mode); no RNG dropout.
    # fr_linear + ho_linear fused via block-diagonal weight: [B,2R] x [2R,2E].
    frh_cat = jnp.concatenate([fake_region, next_h], axis=1).astype(wdt)
    frho = jnp.dot(frh_cat, w_frho_ref[...],
                   preferred_element_type=jnp.float32) + b_frho_ref[...]     # [B, 2E]
    fr     = jax.nn.relu(frho[:, 0:E])                                # fr_linear  [B,E]
    ho_lin = jnp.tanh(frho[:, E:2 * E])                               # ho_linear  [B,E]

    # fr_embed + ho_embed fused via block-diagonal weight: [B,2E] x [2E,2A].
    fh_cat = jnp.concatenate([fr, ho_lin], axis=1).astype(wdt)
    embeds = jnp.dot(fh_cat, w_embed_ref[...],
                     preferred_element_type=jnp.float32) + b_embed_ref[...]  # [B, 2A]
    fr_embed = embeds[:, 0:A]
    ho_embed = embeds[:, A:2 * A]

    wa = w_alpha_ref[...]                                             # [1, A] (f32)
    # Sentinel slot (position 0 of the torch.cat) handled separately -> no concat.
    hA_fr = jnp.tanh(fr_embed + ho_embed)                             # [B, A]
    logit_fr = jnp.sum(hA_fr * wa, axis=-1, keepdims=True)            # [B, 1]

    # Conv slots: keep everything in lane-dense [B, L, 1] layout (no relayouts).
    p_att = p_att_ref[...].astype(jnp.float32)
    hA_conv = jnp.tanh(p_att + ho_embed[:, None, :])                  # [B, L, A]
    logit_conv = jnp.sum(hA_conv * wa, axis=-1, keepdims=True)        # [B, L, 1]
    # alpha_net bias omitted: it shifts every logit equally, softmax is invariant.

    # softmax over the L+1 slots (sentinel + L regions)
    m = jnp.maximum(jnp.max(logit_conv, axis=1), logit_fr)            # [B, 1]
    e_fr = jnp.exp(logit_fr - m)                                      # [B, 1]
    e_conv = jnp.exp(logit_conv - m[:, :, None])                      # [B, L, 1]
    inv_denom = pl.reciprocal(e_fr + jnp.sum(e_conv, axis=1),
                              approx=True)                            # [B, 1]
    pi_fr = e_fr * inv_denom                                          # [B, 1]
    pi_conv = e_conv * inv_denom[:, :, None]                          # [B, L, 1]
    # TODO(synk): att_masks (mask-renormalized softmax) path not wired; masks=None only.

    # visAtt = PI[:,0]*fake_region_lin + sum_l PI[:,l+1]*conv_feat[:,l]
    att = att_ref[...].astype(jnp.float32)
    vis_att = pi_fr * fr + jnp.sum(pi_conv * att, axis=1)             # [B, R]
    atten_out = (vis_att + ho_lin).astype(wdt)
    out_ref[...] = jnp.tanh(
        jnp.dot(atten_out, w_att2h_ref[...], preferred_element_type=jnp.float32)
        + b_att2h_ref[...])                                           # [B, R]


# ----------------------------- wrapper -----------------------------

_VMEM = pl.BlockSpec(memory_space=pltpu.MemorySpace.VMEM)


def adaatt_core_forward(params, xt, fc_feats, att_feats, p_att_feats, state,
                        att_masks=None):
    """Mirrors AdaAttCore.forward (num_layers=1, use_maxout=False, eval-mode dropout)."""
    # TODO(synk): for multi-step decoding, keep weights / att features resident across
    # timesteps (grid over T with constant-index weight BlockSpecs or cross-call VMEM
    # futures) and tile over L / B with an explicit vmem_limit for production sizes;
    # this entry point fuses one full AdaAttCore step to match the module's forward.
    B = xt.shape[0]
    R = fc_feats.shape[1]
    h_prev = state[0][0]                           # [B, R]
    c_prev = state[1][0]                           # [B, R]

    atten_out, h_new, c_new = pl.pallas_call(
        adaatt_core_kernel,
        out_shape=(jax.ShapeDtypeStruct((B, R), jnp.float32),   # attention output
                   jax.ShapeDtypeStruct((B, R), jnp.float32),   # next h
                   jax.ShapeDtypeStruct((B, R), jnp.float32)),  # next c
        in_specs=[_VMEM] * 15,
        out_specs=(_VMEM, _VMEM, _VMEM),
        compiler_params=pltpu.CompilerParams(vmem_limit_bytes=32 * 1024 * 1024),
    )(xt, fc_feats, att_feats, p_att_feats, h_prev, c_prev,
      params["w_in"], params["b_in"],
      params["w_frho"], params["b_frho"],
      params["w_embed"], params["b_embed"],
      params["w_alpha"], params["w_att2h"], params["b_att2h"])

    new_state = (h_new[None], c_new[None])         # ([1,B,R], [1,B,R])
    return atten_out, new_state


# ----------------------------- parameter init -----------------------------

def init_params(key, input_encoding_size, rnn_size, att_hid_size, scale=0.05):
    """Builds fused / stacked weights.  Matmul weights are bf16 (MXU), biases f32."""
    E, R, A = input_encoding_size, rnn_size, att_hid_size
    ks = iter(jax.random.split(key, 32))

    def rw(shape):   # raw f32 weights, pre-transposed [in, out]
        return jax.random.normal(next(ks), shape, jnp.float32) * scale

    # --- AdaAtt_lstm raw weights (num_layers=1, use_maxout=False) ---
    w2h, v2h, h2h = rw((E, 4 * R)), rw((R, 4 * R)), rw((R, 4 * R))
    b_gates = rw((1, 4 * R))                       # b_w2h + b_v2h + b_h2h folded
    r_w2h, r_v2h, r_h2h = rw((E, R)), rw((R, R)), rw((R, R))
    b_r = rw((1, R))                               # r_* biases folded

    # Fused input-side weight: rows = [xt | fc | h_prev], cols = [gates 4R | sentinel R]
    w_in = jnp.concatenate([
        jnp.concatenate([w2h, r_w2h], axis=1),
        jnp.concatenate([v2h, r_v2h], axis=1),
        jnp.concatenate([h2h, r_h2h], axis=1)], axis=0)        # [E+2R, 5R]
    b_in = jnp.concatenate([b_gates, b_r], axis=1)             # [1, 5R]

    # --- AdaAtt_attention raw weights ---
    w_fr,  b_fr  = rw((R, E)), rw((1, E))          # fr_linear (then ReLU)
    w_ho,  b_ho  = rw((R, E)), rw((1, E))          # ho_linear (then tanh)
    w_fre, b_fre = rw((E, A)), rw((1, A))          # fr_embed
    w_hoe, b_hoe = rw((E, A)), rw((1, A))          # ho_embed
    w_alpha = rw((1, A))                           # alpha_net weight row (f32, VPU use)
    # alpha_net bias omitted: softmax is shift-invariant -> no output effect
    w_att2h, b_att2h = rw((R, R)), rw((1, R))

    def block_diag(a, b):
        z_tr = jnp.zeros((a.shape[0], b.shape[1]), jnp.float32)
        z_bl = jnp.zeros((b.shape[0], a.shape[1]), jnp.float32)
        return jnp.concatenate([jnp.concatenate([a, z_tr], axis=1),
                                jnp.concatenate([z_bl, b], axis=1)], axis=0)

    w_frho  = block_diag(w_fr, w_ho)                        # [2R, 2E]
    b_frho  = jnp.concatenate([b_fr, b_ho], axis=1)         # [1, 2E]
    w_embed = block_diag(w_fre, w_hoe)                      # [2E, 2A]
    b_embed = jnp.concatenate([b_fre, b_hoe], axis=1)       # [1, 2A]

    bf = jnp.bfloat16
    return {
        "w_in": w_in.astype(bf),       "b_in": b_in,
        "w_frho": w_frho.astype(bf),   "b_frho": b_frho,
        "w_embed": w_embed.astype(bf), "b_embed": b_embed,
        "w_alpha": w_alpha,
        "w_att2h": w_att2h.astype(bf), "b_att2h": b_att2h,
    }


# ----------------------------- main -----------------------------

if __name__ == "__main__":
    B = 8      # batch
    D = 128    # input_encoding_size == rnn_size == att_hid_size (required equal)
    L = 16     # att_size (number of attended regions)

    key = jax.random.PRNGKey(0)
    kp, kx, kf, ka, kpa, kh, kc = jax.random.split(key, 7)

    params = init_params(kp, D, D, D)

    xt = jax.random.normal(kx, (B, D), jnp.float32)
    fc_feats = jax.random.normal(kf, (B, D), jnp.float32)
    att_feats = jax.random.normal(ka, (B, L, D), jnp.float32)
    p_att_feats = jax.random.normal(kpa, (B, L, D), jnp.float32)
    state = (jax.random.normal(kh, (1, B, D), jnp.float32) * 0.1,
             jax.random.normal(kc, (1, B, D), jnp.float32) * 0.1)

    fwd = jax.jit(adaatt_core_forward)
    atten_out, new_state = fwd(params, xt, fc_feats, att_feats, p_att_feats, state)
    jax.block_until_ready((atten_out, new_state))

    assert atten_out.shape == (B, D)
    assert new_state[0].shape == (1, B, D) and new_state[1].shape == (1, B, D)
    assert bool(jnp.all(jnp.isfinite(atten_out)))
    print("KERNEL_OK")
</pallas_src>

<mosaic_0001>
module attributes {stable_mosaic.version = 11 : i64} {
  func.func @adaatt_core_kernel(%arg0: memref<8x128xf32, #tpu.memory_space<vmem>>, %arg1: memref<8x128xf32, #tpu.memory_space<vmem>>, %arg2: memref<8x16x128xf32, #tpu.memory_space<vmem>>, %arg3: memref<8x16x128xf32, #tpu.memory_space<vmem>>, %arg4: memref<8x128xf32, #tpu.memory_space<vmem>>, %arg5: memref<8x128xf32, #tpu.memory_space<vmem>>, %arg6: memref<384x640xbf16, #tpu.memory_space<vmem>>, %arg7: memref<1x640xf32, #tpu.memory_space<vmem>>, %arg8: memref<256x256xbf16, #tpu.memory_space<vmem>>, %arg9: memref<1x256xf32, #tpu.memory_space<vmem>>, %arg10: memref<256x256xbf16, #tpu.memory_space<vmem>>, %arg11: memref<1x256xf32, #tpu.memory_space<vmem>>, %arg12: memref<1x128xf32, #tpu.memory_space<vmem>>, %arg13: memref<128x128xbf16, #tpu.memory_space<vmem>>, %arg14: memref<1x128xf32, #tpu.memory_space<vmem>>, %arg15: memref<8x128xf32, #tpu.memory_space<vmem>>, %arg16: memref<8x128xf32, #tpu.memory_space<vmem>>, %arg17: memref<8x128xf32, #tpu.memory_space<vmem>>) attributes {dimension_semantics = [], scalar_prefetch = 0 : i64, scratch_operands = 0 : i64, tpu.core_type = #tpu.core_type<tc>} {
    %c0 = arith.constant 0 : index
    %c0_0 = arith.constant 0 : index
    %0 = vector.load %arg4[%c0, %c0_0] : memref<8x128xf32, #tpu.memory_space<vmem>>, vector<8x128xf32>
    %c0_1 = arith.constant 0 : index
    %c0_2 = arith.constant 0 : index
    %1 = vector.load %arg5[%c0_1, %c0_2] : memref<8x128xf32, #tpu.memory_space<vmem>>, vector<8x128xf32>
    %c0_3 = arith.constant 0 : index
    %c0_4 = arith.constant 0 : index
    %2 = vector.load %arg0[%c0_3, %c0_4] : memref<8x128xf32, #tpu.memory_space<vmem>>, vector<8x128xf32>
    %c0_5 = arith.constant 0 : index
    %c0_6 = arith.constant 0 : index
    %3 = vector.load %arg1[%c0_5, %c0_6] : memref<8x128xf32, #tpu.memory_space<vmem>>, vector<8x128xf32>
    %4 = tpu.concatenate %2, %3, %0 in 1 : vector<8x128xf32>, vector<8x128xf32>, vector<8x128xf32> -> vector<8x384xf32>
    %5 = arith.truncf %4 : vector<8x384xf32> to vector<8x384xbf16>
    %c0_7 = arith.constant 0 : index
    %c0_8 = arith.constant 0 : index
    %6 = vector.load %arg6[%c0_7, %c0_8] : memref<384x640xbf16, #tpu.memory_space<vmem>>, vector<384x640xbf16>
    %cst = arith.constant dense<0.000000e+00> : vector<8x640xf32>
    %7 = tpu.matmul %5, %6, %cst {dimension_numbers = #tpu.dot_dimension_numbers<[1], [0], [0], [1], [0, 0, 1, 1], [], []>} : vector<8x384xbf16>, vector<384x640xbf16>, vector<8x640xf32> -> vector<8x640xf32>
    %c0_9 = arith.constant 0 : index
    %c0_10 = arith.constant 0 : index
    %8 = vector.load %arg7[%c0_9, %c0_10] : memref<1x640xf32, #tpu.memory_space<vmem>>, vector<1x640xf32>
    %9 = vector.broadcast %8 : vector<1x640xf32> to vector<8x640xf32>
    %10 = arith.addf %7, %9 : vector<8x640xf32>
    %11 = vector.extract_strided_slice %10 {offsets = [0, 0], sizes = [8, 128], strides = [1, 1]} : vector<8x640xf32> to vector<8x128xf32>
    %12 = arith.negf %11 : vector<8x128xf32>
    %13 = math.exp %12 : vector<8x128xf32>
    %cst_11 = arith.constant 1.000000e+00 : f32
    %14 = vector.broadcast %cst_11 : f32 to vector<8x128xf32>
    %15 = arith.addf %14, %13 : vector<8x128xf32>
    %16 = arith.divf %14, %15 : vector<8x128xf32>
    %17 = vector.extract_strided_slice %10 {offsets = [0, 128], sizes = [8, 128], strides = [1, 1]} : vector<8x640xf32> to vector<8x128xf32>
    %18 = arith.negf %17 : vector<8x128xf32>
    %19 = math.exp %18 : vector<8x128xf32>
    %cst_12 = arith.constant 1.000000e+00 : f32
    %20 = vector.broadcast %cst_12 : f32 to vector<8x128xf32>
    %21 = arith.addf %20, %19 : vector<8x128xf32>
    %22 = arith.divf %20, %21 : vector<8x128xf32>
    %23 = vector.extract_strided_slice %10 {offsets = [0, 256], sizes = [8, 128], strides = [1, 1]} : vector<8x640xf32> to vector<8x128xf32>
    %24 = arith.negf %23 : vector<8x128xf32>
    %25 = math.exp %24 : vector<8x128xf32>
    %cst_13 = arith.constant 1.000000e+00 : f32
    %26 = vector.broadcast %cst_13 : f32 to vector<8x128xf32>
    %27 = arith.addf %26, %25 : vector<8x128xf32>
    %28 = arith.divf %26, %27 : vector<8x128xf32>
    %29 = vector.extract_strided_slice %10 {offsets = [0, 384], sizes = [8, 128], strides = [1, 1]} : vector<8x640xf32> to vector<8x128xf32>
    %30 = math.tanh %29 : vector<8x128xf32>
    %31 = vector.extract_strided_slice %10 {offsets = [0, 512], sizes = [8, 128], strides = [1, 1]} : vector<8x640xf32> to vector<8x128xf32>
    %32 = arith.mulf %22, %1 : vector<8x128xf32>
    %33 = arith.mulf %16, %30 : vector<8x128xf32>
    %34 = arith.addf %32, %33 : vector<8x128xf32>
    %35 = math.tanh %34 : vector<8x128xf32>
    %36 = arith.mulf %28, %35 : vector<8x128xf32>
    %37 = arith.negf %31 : vector<8x128xf32>
    %38 = math.exp %37 : vector<8x128xf32>
    %cst_14 = arith.constant 1.000000e+00 : f32
    %39 = vector.broadcast %cst_14 : f32 to vector<8x128xf32>
    %40 = arith.addf %39, %38 : vector<8x128xf32>
    %41 = arith.divf %39, %40 : vector<8x128xf32>
    %42 = arith.mulf %41, %35 : vector<8x128xf32>
    %c0_15 = arith.constant 0 : index
    %c0_16 = arith.constant 0 : index
    %43 = vector.load %arg16[%c0_15, %c0_16] : memref<8x128xf32, #tpu.memory_space<vmem>>, vector<8x128xf32>
    tpu.vector_store %arg16[%c0_15, %c0_16], %36 {strides = array<i32>} : memref<8x128xf32, #tpu.memory_space<vmem>>, vector<8x128xf32>,
    %c0_17 = arith.constant 0 : index
    %c0_18 = arith.constant 0 : index
    %44 = vector.load %arg17[%c0_17, %c0_18] : memref<8x128xf32, #tpu.memory_space<vmem>>, vector<8x128xf32>
    tpu.vector_store %arg17[%c0_17, %c0_18], %34 {strides = array<i32>} : memref<8x128xf32, #tpu.memory_space<vmem>>, vector<8x128xf32>,
    %45 = tpu.concatenate %42, %36 in 1 : vector<8x128xf32>, vector<8x128xf32> -> vector<8x256xf32>
    %46 = arith.truncf %45 : vector<8x256xf32> to vector<8x256xbf16>
    %c0_19 = arith.constant 0 : index
    %c0_20 = arith.constant 0 : index
    %47 = vector.load %arg8[%c0_19, %c0_20] : memref<256x256xbf16, #tpu.memory_space<vmem>>, vector<256x256xbf16>
    %cst_21 = arith.constant dense<0.000000e+00> : vector<8x256xf32>
    %48 = tpu.matmul %46, %47, %cst_21 {dimension_numbers = #tpu.dot_dimension_numbers<[1], [0], [0], [1], [0, 0, 1, 1], [], []>} : vector<8x256xbf16>, vector<256x256xbf16>, vector<8x256xf32> -> vector<8x256xf32>
    %c0_22 = arith.constant 0 : index
    %c0_23 = arith.constant 0 : index
    %49 = vector.load %arg9[%c0_22, %c0_23] : memref<1x256xf32, #tpu.memory_space<vmem>>, vector<1x256xf32>
    %50 = vector.broadcast %49 : vector<1x256xf32> to vector<8x256xf32>
    %51 = arith.addf %48, %50 : vector<8x256xf32>
    %52 = vector.extract_strided_slice %51 {offsets = [0, 0], sizes = [8, 128], strides = [1, 1]} : vector<8x256xf32> to vector<8x128xf32>
    %cst_24 = arith.constant 0.000000e+00 : f32
    %53 = vector.broadcast %cst_24 : f32 to vector<8x128xf32>
    %54 = arith.maximumf %52, %53 : vector<8x128xf32>
    %55 = vector.extract_strided_slice %51 {offsets = [0, 128], sizes = [8, 128], strides = [1, 1]} : vector<8x256xf32> to vector<8x128xf32>
    %56 = math.tanh %55 : vector<8x128xf32>
    %57 = tpu.concatenate %54, %56 in 1 : vector<8x128xf32>, vector<8x128xf32> -> vector<8x256xf32>
    %58 = arith.truncf %57 : vector<8x256xf32> to vector<8x256xbf16>
    %c0_25 = arith.constant 0 : index
    %c0_26 = arith.constant 0 : index
    %59 = vector.load %arg10[%c0_25, %c0_26] : memref<256x256xbf16, #tpu.memory_space<vmem>>, vector<256x256xbf16>
    %cst_27 = arith.constant dense<0.000000e+00> : vector<8x256xf32>
    %60 = tpu.matmul %58, %59, %cst_27 {dimension_numbers = #tpu.dot_dimension_numbers<[1], [0], [0], [1], [0, 0, 1, 1], [], []>} : vector<8x256xbf16>, vector<256x256xbf16>, vector<8x256xf32> -> vector<8x256xf32>
    %c0_28 = arith.constant 0 : index
    %c0_29 = arith.constant 0 : index
    %61 = vector.load %arg11[%c0_28, %c0_29] : memref<1x256xf32, #tpu.memory_space<vmem>>, vector<1x256xf32>
    %62 = vector.broadcast %61 : vector<1x256xf32> to vector<8x256xf32>
    %63 = arith.addf %60, %62 : vector<8x256xf32>
    %64 = vector.extract_strided_slice %63 {offsets = [0, 0], sizes = [8, 128], strides = [1, 1]} : vector<8x256xf32> to vector<8x128xf32>
    %65 = vector.extract_strided_slice %63 {offsets = [0, 128], sizes = [8, 128], strides = [1, 1]} : vector<8x256xf32> to vector<8x128xf32>
    %c0_30 = arith.constant 0 : index
    %c0_31 = arith.constant 0 : index
    %66 = vector.load %arg12[%c0_30, %c0_31] : memref<1x128xf32, #tpu.memory_space<vmem>>, vector<1x128xf32>
    %67 = arith.addf %64, %65 : vector<8x128xf32>
    %68 = math.tanh %67 : vector<8x128xf32>
    %69 = vector.broadcast %66 : vector<1x128xf32> to vector<8x128xf32>
    %70 = arith.mulf %68, %69 : vector<8x128xf32>
    %cst_32 = arith.constant dense<0.000000e+00> : vector<8xf32>
    %71 = vector.multi_reduction <add>, %70, %cst_32 [1] : vector<8x128xf32> to vector<8xf32>
    %72 = vector.shape_cast %71 : vector<8xf32> to vector<8x1xf32>
    %c0_33 = arith.constant 0 : index
    %c0_34 = arith.constant 0 : index
    %c0_35 = arith.constant 0 : index
    %73 = vector.load %arg3[%c0_33, %c0_34, %c0_35] : memref<8x16x128xf32, #tpu.memory_space<vmem>>, vector<8x16x128xf32>
    %74 = vector.shape_cast %65 : vector<8x128xf32> to vector<8x1x128xf32>
    %75 = vector.broadcast %74 : vector<8x1x128xf32> to vector<8x16x128xf32>
    %76 = arith.addf %73, %75 : vector<8x16x128xf32>
    %77 = math.tanh %76 : vector<8x16x128xf32>
    %78 = vector.shape_cast %66 : vector<1x128xf32> to vector<1x1x128xf32>
    %79 = vector.broadcast %78 : vector<1x1x128xf32> to vector<8x16x128xf32>
    %80 = arith.mulf %77, %79 : vector<8x16x128xf32>
    %cst_36 = arith.constant dense<0.000000e+00> : vector<8x16xf32>
    %81 = vector.multi_reduction <add>, %80, %cst_36 [2] : vector<8x16x128xf32> to vector<8x16xf32>
    %82 = vector.shape_cast %81 : vector<8x16xf32> to vector<8x16x1xf32>
    %cst_37 = arith.constant dense<0xFF800000> : vector<8x1xf32>
    %83 = vector.multi_reduction <maximumf>, %82, %cst_37 [1] : vector<8x16x1xf32> to vector<8x1xf32>
    %84 = arith.maximumf %83, %72 : vector<8x1xf32>
    %85 = arith.subf %72, %84 : vector<8x1xf32>
    %86 = math.exp %85 : vector<8x1xf32>
    %87 = vector.shape_cast %84 : vector<8x1xf32> to vector<8x1x1xf32>
    %88 = vector.broadcast %87 : vector<8x1x1xf32> to vector<8x16x1xf32>
    %89 = arith.subf %82, %88 : vector<8x16x1xf32>
    %90 = math.exp %89 : vector<8x16x1xf32>
    %cst_38 = arith.constant dense<0.000000e+00> : vector<8x1xf32>
    %91 = vector.multi_reduction <add>, %90, %cst_38 [1] : vector<8x16x1xf32> to vector<8x1xf32>
    %92 = arith.addf %86, %91 : vector<8x1xf32>
    %93 = tpu.reciprocal %92 {approx = true} : vector<8x1xf32> -> vector<8x1xf32>
    %94 = arith.mulf %86, %93 : vector<8x1xf32>
    %95 = vector.shape_cast %93 : vector<8x1xf32> to vector<8x1x1xf32>
    %96 = vector.broadcast %95 : vector<8x1x1xf32> to vector<8x16x1xf32>
    %97 = arith.mulf %90, %96 : vector<8x16x1xf32>
    %c0_39 = arith.constant 0 : index
    %c0_40 = arith.constant 0 : index
    %c0_41 = arith.constant 0 : index
    %98 = vector.load %arg2[%c0_39, %c0_40, %c0_41] : memref<8x16x128xf32, #tpu.memory_space<vmem>>, vector<8x16x128xf32>
    %99 = vector.broadcast %94 : vector<8x1xf32> to vector<8x128xf32>
    %100 = arith.mulf %99, %54 : vector<8x128xf32>
    %101 = vector.broadcast %97 : vector<8x16x1xf32> to vector<8x16x128xf32>
    %102 = arith.mulf %101, %98 : vector<8x16x128xf32>
    %cst_42 = arith.constant dense<0.000000e+00> : vector<8x128xf32>
    %103 = vector.multi_reduction <add>, %102, %cst_42 [1] : vector<8x16x128xf32> to vector<8x128xf32>
    %104 = arith.addf %100, %103 : vector<8x128xf32>
    %105 = arith.addf %104, %56 : vector<8x128xf32>
    %106 = arith.truncf %105 : vector<8x128xf32> to vector<8x128xbf16>
    %c0_43 = arith.constant 0 : index
    %c0_44 = arith.constant 0 : index
    %107 = vector.load %arg13[%c0_43, %c0_44] : memref<128x128xbf16, #tpu.memory_space<vmem>>, vector<128x128xbf16>
    %cst_45 = arith.constant dense<0.000000e+00> : vector<8x128xf32>
    %108 = tpu.matmul %106, %107, %cst_45 {dimension_numbers = #tpu.dot_dimension_numbers<[1], [0], [0], [1], [0, 0, 1, 1], [], []>} : vector<8x128xbf16>, vector<128x128xbf16>, vector<8x128xf32> -> vector<8x128xf32>
    %c0_46 = arith.constant 0 : index
    %c0_47 = arith.constant 0 : index
    %109 = vector.load %arg14[%c0_46, %c0_47] : memref<1x128xf32, #tpu.memory_space<vmem>>, vector<1x128xf32>
    %110 = vector.broadcast %109 : vector<1x128xf32> to vector<8x128xf32>
    %111 = arith.addf %108, %110 : vector<8x128xf32>
    %112 = math.tanh %111 : vector<8x128xf32>
    %c0_48 = arith.constant 0 : index
    %c0_49 = arith.constant 0 : index
    %113 = vector.load %arg15[%c0_48, %c0_49] : memref<8x128xf32, #tpu.memory_space<vmem>>, vector<8x128xf32>
    tpu.vector_store %arg15[%c0_48, %c0_49], %112 {strides = array<i32>} : memref<8x128xf32, #tpu.memory_space<vmem>>, vector<8x128xf32>,
    return
  }
}

</mosaic_0001>

<bundles_post_ra>
// kernel: adaatt_core_forward.1
= control target key start
LH: loop header
LB: loop body
LE: loop exit
PB: predicated region body
PF: predicated region fallthrough
CT: control target
= control target key end

     0   :  { %s4321_s0 = inlined_call_operand.vmem [shape: f32[8,128], index: 0, kind: input, shape index: {}]   ;;  %s4322_s1 = inlined_call_operand.vmem [shape: f32[8,128], index: 1, kind: input, shape index: {}]   ;;  %s4323_s2 = inlined_call_operand.hbm [shape: f32[8,16,128], index: 2, kind: input, shape index: {}]   ;;  %s4324_s3 = inlined_call_operand.hbm [shape: f32[8,16,128], index: 3, kind: input, shape index: {}]   ;;  %s4325_s4 = inlined_call_operand.vmem [shape: f32[8,128], index: 4, kind: input, shape index: {}]   ;;  %s4326_s5 = inlined_call_operand.vmem [shape: f32[8,128], index: 5, kind: input, shape index: {}]   ;;  %s4327_s6 = inlined_call_operand.hbm [shape: bf16[384,640], index: 6, kind: input, shape index: {}]   ;;  %s4328_s7 = inlined_call_operand.hbm [shape: f32[1,640], index: 7, kind: input, shape index: {}]   ;;  %s4329_s8 = inlined_call_operand.hbm [shape: bf16[256,256], index: 8, kind: input, shape index: {}]   ;;  %s4330_s9 = inlined_call_operand.vmem [shape: f32[1,256], index: 9, kind: input, shape index: {}]   ;;  %s4331_s10 = inlined_call_operand.hbm [shape: bf16[256,256], index: 10, kind: input, shape index: {}]   ;;  %s4332_s11 = inlined_call_operand.hbm [shape: f32[1,256], index: 11, kind: input, shape index: {}]   ;;  %s4333_s12 = inlined_call_operand.hbm [shape: f32[1,128], index: 12, kind: input, shape index: {}]   ;;  %s4334_s13 = inlined_call_operand.hbm [shape: bf16[128,128], index: 13, kind: input, shape index: {}]   ;;  %s4335_s14 = inlined_call_operand.hbm [shape: f32[1,128], index: 14, kind: input, shape index: {}]   ;;  %s4336_s15 = inlined_call_operand.hbm [shape: f32[8,128], index: 15, kind: output, shape index: {0}]   ;;  %s4337_s16 = inlined_call_operand.hbm [shape: f32[8,128], index: 16, kind: output, shape index: {1}]   ;;  %s4338_s17 = inlined_call_operand.hbm [shape: f32[8,128], index: 17, kind: output, shape index: {2}]  }
   0x1   :  { %4339 = sst [smem:[#allocation31_spill]] %s4321_s0 }
   0x2   :  { %4340 = sst [smem:[#allocation32_spill]] %s4322_s1 }
   0x3   :  { %23 = vsyncpa [#allocation3], 0 }
   0x4   :  { %24 = vsyncpa [#allocation6], 0 }
   0x5   :  { %25 = vsyncpa [#allocation9], 0 }
   0x6   :  { %26 = vsyncpa [#allocation12], 0 }
   0x7   :  { %27 = vsyncpa [#allocation15], 0 }
   0x8   :  { %28 = vsyncpa [#allocation18], 0 }
   0x9   :  { %29 = vsyncpa [#allocation4], 0 }
   0xa   :  { %30 = vsyncpa [#allocation21], 0  ;;  %s3684_s24 = smov [#allocation5]   ;;  %s3685_s26 = smov [#allocation8]  }
   0xb   :  { %s52_s25 = sshll.u32 %s3684_s24, 4  ;;  %s81_s27 = sshll.u32 %s3685_s26, 4  ;;  %s53_s25 = int_to_ptr.vmem [resolvable:$true] %s52_s25  ;;  %s3797_s27 = int_to_ptr.vmem [resolvable:$true] %s81_s27 }
   0xc   :  { %s3382_s0 = scalar_lea.hbm %s4324_s3, 2048 }
   0xd   :  { %p3383_p0 = scmp.ne.s32.totalorder %s4324_s3, %s3382_s0  ;;  %p3386_p1 = scmp.lt.u32.totalorder %s3382_s0, %s4324_s3 }
   0xf   :  { %p3388_p2 = pnand %p3386_p1, %p3383_p0 }
  0x11   :  { %3391 = shalt.err (!%p3388_p2)
}
  0x12   :  { %s3392_s20 = scalar_lea.vmem %s53_s25, 2048  ;;  %p3397_p4 = scmp.lt.s32.totalorder %s53_s25, %s53_s25 }
  0x13   :  { %p3393_p3 = scmp.ne.s32.totalorder %s53_s25, %s3392_s20  ;;  %p3398_p5 = scmp.lt.s32.totalorder %s3392_s20, %s3392_s20 }
  0x15   :  { %p3399_p6 = por %p3398_p5, %p3397_p4 }
  0x17   :  { %p3400_p7 = pnand %p3399_p6, %p3393_p3 }
  0x19   :  { %3403 = shalt.err (!%p3400_p7)
}
  0x1a   :  { %s3686_s21 = smov 128   ;;  %s3687_s22 = smov 8  }
  0x1b   :  { %58 = dma.hbm_to_vmem [thread:$0]  %s4324_s3, 2048, %s53_s25, [#allocation6], %s3686_s21, %s3686_s21, %s3687_s22  }
  0x1c   :  { %s3404_s29 = scalar_lea.hbm %s4328_s7, 80 }
  0x1d   :  { %p3405_p8 = scmp.ne.s32.totalorder %s4328_s7, %s3404_s29  ;;  %p3408_p9 = scmp.lt.u32.totalorder %s3404_s29, %s4328_s7 }
  0x1f   :  { %p3410_p10 = pnand %p3408_p9, %p3405_p8 }
  0x21   :  { %3413 = shalt.err (!%p3410_p10)
}
  0x22   :  { %s3414_s1 = scalar_lea.vmem %s3797_s27, 80  ;;  %s3418_s3 = scalar_lea.vmem %s3797_s27, 96 }
  0x23   :  { %p3415_p11 = scmp.ne.s32.totalorder %s3797_s27, %s3414_s1  ;;  %p3419_p12 = scmp.lt.s32.totalorder %s3797_s27, %s3797_s27 }
  0x24   :  { %p3420_p13 = scmp.lt.s32.totalorder %s3418_s3, %s3414_s1 }
  0x26   :  { %p3421_p0 = por %p3420_p13, %p3419_p12 }
  0x28   :  { %p3422_p1 = pnand %p3421_p0, %p3415_p11 }
  0x2a   :  { %3425 = shalt.err (!%p3422_p1)
}
  0x2b   :  { %84 = dma.hbm_to_vmem [thread:$0]  %s4328_s7, 80, %s3797_s27, [#allocation9]  }
  0x2c   :  { %s3688_s23 = smov [#allocation11]   ;;  %s3689_s26 = smov [#allocation14]  }
  0x2d   :  { %s104_s24 = sshll.u32 %s3688_s23, 4  ;;  %s127_s28 = sshll.u32 %s3689_s26, 4  ;;  %s105_s24 = int_to_ptr.vmem [resolvable:$true] %s104_s24  ;;  %s128_s28 = int_to_ptr.vmem [resolvable:$true] %s127_s28 }
  0x2e   :  { %s3426_s30 = scalar_lea.hbm %s4331_s10, 4096 }
  0x2f   :  { %p3427_p2 = scmp.ne.s32.totalorder %s4331_s10, %s3426_s30  ;;  %p3430_p3 = scmp.lt.u32.totalorder %s3426_s30, %s4331_s10 }
  0x31   :  { %p3432_p4 = pnand %p3430_p3, %p3427_p2 }
  0x33   :  { %3435 = shalt.err (!%p3432_p4)
}
  0x34   :  { %s3436_s7 = scalar_lea.vmem %s105_s24, 4096  ;;  %p3441_p6 = scmp.lt.s32.totalorder %s105_s24, %s105_s24 }
  0x35   :  { %p3437_p5 = scmp.ne.s32.totalorder %s105_s24, %s3436_s7  ;;  %p3442_p7 = scmp.lt.s32.totalorder %s3436_s7, %s3436_s7 }
  0x37   :  { %p3443_p8 = por %p3442_p7, %p3441_p6 }
  0x39   :  { %p3444_p9 = pnand %p3443_p8, %p3437_p5 }
  0x3b   :  { %3447 = shalt.err (!%p3444_p9)
}
  0x3c   :  { %110 = dma.hbm_to_vmem [thread:$0]  %s4331_s10, 4096, %s105_s24, [#allocation12], %s3686_s21, %s3686_s21, %s3687_s22  }
  0x3d   :  { %s3448_s26 = scalar_lea.hbm %s4333_s12, 16 }
  0x3e   :  { %p3449_p10 = scmp.ne.s32.totalorder %s4333_s12, %s3448_s26  ;;  %p3452_p11 = scmp.lt.u32.totalorder %s3448_s26, %s4333_s12 }
  0x40   :  { %p3454_p12 = pnand %p3452_p11, %p3449_p10 }
  0x42   :  { %3457 = shalt.err (!%p3454_p12)
}
  0x43   :  { %s3458_s19 = scalar_lea.vmem %s128_s28, 16  ;;  %s3462_s1 = scalar_lea.vmem %s128_s28, 32 }
  0x44   :  { %p3459_p13 = scmp.ne.s32.totalorder %s128_s28, %s3458_s19  ;;  %p3463_p0 = scmp.lt.s32.totalorder %s128_s28, %s128_s28 }
  0x45   :  { %p3464_p1 = scmp.lt.s32.totalorder %s3462_s1, %s3458_s19 }
  0x47   :  { %p3465_p2 = por %p3464_p1, %p3463_p0 }
  0x49   :  { %p3466_p3 = pnand %p3465_p2, %p3459_p13 }
  0x4b   :  { %3469 = shalt.err (!%p3466_p3)
}
  0x4c   :  { %130 = dma.hbm_to_vmem [thread:$0]  %s4333_s12, 16, %s128_s28, [#allocation15]  }
  0x4d   :  { %s3690_s3 = smov [#allocation2]   ;;  %s3691_s27 = smov [#allocation7]  }
  0x4e   :  { %s40_s7 = sshll.u32 %s3690_s3, 4  ;;  %s68_s25 = sshll.u32 %s3691_s27, 4  ;;  %s41_s7 = int_to_ptr.vmem [resolvable:$true] %s40_s7  ;;  %s3859_s25 = int_to_ptr.vmem [resolvable:$true] %s68_s25 }
  0x4f   :  { %s3470_s26 = scalar_lea.hbm %s4323_s2, 2048 }
  0x50   :  { %p3471_p4 = scmp.ne.s32.totalorder %s4323_s2, %s3470_s26  ;;  %p3474_p5 = scmp.lt.u32.totalorder %s3470_s26, %s4323_s2 }
  0x52   :  { %p3476_p6 = pnand %p3474_p5, %p3471_p4 }
  0x54   :  { %3479 = shalt.err (!%p3476_p6)
}
  0x55   :  { %s3480_s12 = scalar_lea.vmem %s41_s7, 2048  ;;  %p3485_p8 = scmp.lt.s32.totalorder %s41_s7, %s41_s7 }
  0x56   :  { %p3481_p7 = scmp.ne.s32.totalorder %s41_s7, %s3480_s12  ;;  %p3486_p9 = scmp.lt.s32.totalorder %s3480_s12, %s3480_s12 }
  0x58   :  { %p3487_p10 = por %p3486_p9, %p3485_p8 }
  0x5a   :  { %p3488_p11 = pnand %p3487_p10, %p3481_p7 }
  0x5c   :  { %3491 = shalt.err (!%p3488_p11)
}
  0x5d   :  { %46 = dma.hbm_to_vmem [thread:$0]  %s4323_s2, 2048, %s41_s7, [#allocation3], %s3686_s21, %s3686_s21, %s3687_s22  }
  0x5e   :  { %s3492_s24 = scalar_lea.hbm %s4327_s6, 15360 }
  0x5f   :  { %p3493_p12 = scmp.ne.s32.totalorder %s4327_s6, %s3492_s24  ;;  %p3496_p13 = scmp.lt.u32.totalorder %s3492_s24, %s4327_s6 }
  0x61   :  { %p3498_p0 = pnand %p3496_p13, %p3493_p12 }
  0x63   :  { %3501 = shalt.err (!%p3498_p0)
}
  0x64   :  { %s3502_s26 = scalar_lea.vmem %s3859_s25, 15360  ;;  %p3507_p2 = scmp.lt.s32.totalorder %s3859_s25, %s3859_s25 }
  0x65   :  { %p3503_p1 = scmp.ne.s32.totalorder %s3859_s25, %s3502_s26  ;;  %p3508_p3 = scmp.lt.s32.totalorder %s3502_s26, %s3502_s26 }
  0x67   :  { %p3509_p4 = por %p3508_p3, %p3507_p2 }
  0x69   :  { %p3510_p5 = pnand %p3509_p4, %p3503_p1 }
  0x6b   :  { %3513 = shalt.err (!%p3510_p5)
}
  0x6c   :  { %s3692_s2 = smov 320   ;;  %s3693_s7 = smov 20  }
  0x6d   :  { %74 = dma.hbm_to_vmem [thread:$0]  %s4327_s6, 15360, %s3859_s25, [#allocation6], %s3692_s2, %s3692_s2, %s3693_s7  }
  0x6e   :  { %s3694_s30 = smov [#allocation10]   ;;  %s3695_s12 = smov [#allocation13]  }
  0x6f   :  { %s90_s18 = sshll.u32 %s3694_s30, 4  ;;  %s117_s28 = sshll.u32 %s3695_s12, 4  ;;  %s91_s18 = int_to_ptr.vmem [resolvable:$true] %s90_s18  ;;  %s118_s28 = int_to_ptr.vmem [resolvable:$true] %s117_s28 }
  0x70   :  { %s3514_s10 = scalar_lea.hbm %s4329_s8, 4096 }
  0x71   :  { %p3515_p6 = scmp.ne.s32.totalorder %s4329_s8, %s3514_s10  ;;  %p3518_p7 = scmp.lt.u32.totalorder %s3514_s10, %s4329_s8 }
  0x73   :  { %p3520_p8 = pnand %p3518_p7, %p3515_p6 }
  0x75   :  { %3523 = shalt.err (!%p3520_p8)
}
  0x76   :  { %s3524_s6 = scalar_lea.vmem %s91_s18, 4096  ;;  %p3529_p10 = scmp.lt.s32.totalorder %s91_s18, %s91_s18 }
  0x77   :  { %p3525_p9 = scmp.ne.s32.totalorder %s91_s18, %s3524_s6  ;;  %p3530_p11 = scmp.lt.s32.totalorder %s3524_s6, %s3524_s6 }
  0x79   :  { %p3531_p12 = por %p3530_p11, %p3529_p10 }
  0x7b   :  { %p3532_p13 = pnand %p3531_p12, %p3525_p9 }
  0x7d   :  { %3535 = shalt.err (!%p3532_p13)
}
  0x7e   :  { %96 = dma.hbm_to_vmem [thread:$0]  %s4329_s8, 4096, %s91_s18, [#allocation9], %s3686_s21, %s3686_s21, %s3687_s22  }
  0x7f   :  { %s3536_s7 = scalar_lea.hbm %s4332_s11, 32 }
  0x80   :  { %p3537_p0 = scmp.ne.s32.totalorder %s4332_s11, %s3536_s7  ;;  %p3540_p1 = scmp.lt.u32.totalorder %s3536_s7, %s4332_s11 }
  0x82   :  { %p3542_p2 = pnand %p3540_p1, %p3537_p0 }
  0x84   :  { %3545 = shalt.err (!%p3542_p2)
}
  0x85   :  { %s3546_s19 = scalar_lea.vmem %s118_s28, 32  ;;  %p3551_p4 = scmp.lt.s32.totalorder %s118_s28, %s118_s28 }
  0x86   :  { %p3547_p3 = scmp.ne.s32.totalorder %s118_s28, %s3546_s19  ;;  %p3552_p5 = scmp.lt.s32.totalorder %s3546_s19, %s3546_s19 }
  0x88   :  { %p3553_p6 = por %p3552_p5, %p3551_p4 }
  0x8a   :  { %p3554_p7 = pnand %p3553_p6, %p3547_p3 }
  0x8c   :  { %3557 = shalt.err (!%p3554_p7)
}
  0x8d   :  { %120 = dma.hbm_to_vmem [thread:$0]  %s4332_s11, 32, %s118_s28, [#allocation12]  }
  0x8e   :  { %s3696_s22 = smov [#allocation16]   ;;  %s3558_s24 = scalar_lea.hbm %s4334_s13, 1024 }
  0x8f   :  { %s136_s18 = sshll.u32 %s3696_s22, 4  ;;  %p3559_p8 = scmp.ne.s32.totalorder %s4334_s13, %s3558_s24  ;;  %s137_s18 = int_to_ptr.vmem [resolvable:$true] %s136_s18 }
  0x90   :  { %p3562_p9 = scmp.lt.u32.totalorder %s3558_s24, %s4334_s13 }
  0x92   :  { %p3564_p10 = pnand %p3562_p9, %p3559_p8 }
  0x94   :  { %3567 = shalt.err (!%p3564_p10)
}
  0x95   :  { %s3568_s25 = scalar_lea.vmem %s137_s18, 1024  ;;  %p3573_p12 = scmp.lt.s32.totalorder %s137_s18, %s137_s18 }
  0x96   :  { %p3569_p11 = scmp.ne.s32.totalorder %s137_s18, %s3568_s25  ;;  %p3574_p13 = scmp.lt.s32.totalorder %s3568_s25, %s3568_s25 }
  0x98   :  { %p3575_p0 = por %p3574_p13, %p3573_p12 }
  0x9a   :  { %p3576_p1 = pnand %p3575_p0, %p3569_p11 }
  0x9c   :  { %3579 = shalt.err (!%p3576_p1)
}
  0x9d   :  { %s3697_s11 = smov 64   ;;  %s3698_s28 = smov 4  }
  0x9e   :  { %142 = dma.hbm_to_vmem [thread:$0]  %s4334_s13, 1024, %s137_s18, [#allocation15], %s3697_s11, %s3697_s11, %s3698_s28  }
  0x9f   :  { %s3699_s2 = smov [#allocation17]   ;;  %s3580_s30 = scalar_lea.hbm %s4335_s14, 16 }
  0xa0   :  { %s149_s7 = sshll.u32 %s3699_s2, 4  ;;  %p3581_p2 = scmp.ne.s32.totalorder %s4335_s14, %s3580_s30  ;;  %s150_s7 = int_to_ptr.vmem [resolvable:$true] %s149_s7 }
  0xa1   :  { %p3584_p3 = scmp.lt.u32.totalorder %s3580_s30, %s4335_s14 }
  0xa3   :  { %p3586_p4 = pnand %p3584_p3, %p3581_p2 }
  0xa5   :  { %3589 = shalt.err (!%p3586_p4)
}
  0xa6   :  { %s3590_s22 = scalar_lea.vmem %s150_s7, 16  ;;  %s3594_s13 = scalar_lea.vmem %s150_s7, 32 }
  0xa7   :  { %p3591_p5 = scmp.ne.s32.totalorder %s150_s7, %s3590_s22  ;;  %p3595_p6 = scmp.lt.s32.totalorder %s150_s7, %s150_s7 }
  0xa8   :  { %p3596_p7 = scmp.lt.s32.totalorder %s3594_s13, %s3590_s22 }
  0xaa   :  { %p3597_p8 = por %p3596_p7, %p3595_p6 }
  0xac   :  { %p3598_p9 = pnand %p3597_p8, %p3591_p5 }
  0xae   :  { %3601 = shalt.err (!%p3598_p9)
}
  0xaf   :  { %152 = dma.hbm_to_vmem [thread:$0]  %s4335_s14, 16, %s150_s7, [#allocation18]  }
  0xb0   :  { %3668 = dma.done.wait [#allocation3], 2048  }
  0xb1   :  { %3669 = vsyncadd [#allocation3], 4294965248 }
  0xb2   :  { %3670 = dma.done.wait [#allocation6], 17408  }
  0xb3   :  { %3671 = vsyncadd [#allocation6], 4294949888 }
  0xb4   :  { %3672 = dma.done.wait [#allocation9], 4176  }
  0xb5   :  { %3673 = vsyncadd [#allocation9], 4294963120 }
  0xb6   :  { %3674 = dma.done.wait [#allocation12], 4128  }
  0xb7   :  { %3675 = vsyncadd [#allocation12], 4294963168 }
  0xb8   :  { %3676 = dma.done.wait [#allocation15], 1040  }
  0xb9   :  { %3677 = vsyncadd [#allocation15], 4294966256 }
  0xba   :  { %3678 = dma.done.wait [#allocation18], 16  }
  0xbb   :  { %3679 = vsyncadd [#allocation18], 4294967280  ;;  %v3700_v0 = vmov 0   ;;  %v3016_v1 = vld [vmem:[#allocation7 + $0x4] ss:$20 sps:$4 sm:$0xff]   ;;  %s4341_s24 = sld [smem:[#allocation32_spill]] }
  0xbc   :  { %3015 = vset.pattern.permute.xlu0 %v3700_v0  ;;  %3014 = vset.pattern.permute.xlu1 %v3700_v0  ;;  %v3018_v2 = vld [vmem:[#allocation7 + $0xc] ss:$20 sps:$4 sm:$0xff]   ;;  %v3021_v4 = vld [vmem:[#allocation7 + $0x8] ss:$20 sps:$4 sm:$0xff]   ;;  %v3027_v8 = vld [vmem:[#allocation7 + $0x30] ss:$20 sps:$4 sm:$0xff]  }
  0xbd   :  { %986 = vmatprep.subr.bf16.mxu0 %v3016_v1  ;;  %v3020_v3 = vld [vmem:[#allocation7] ss:$20 sps:$4 sm:$0xff]   ;;  %1068 = vmatprep.subr.bf16.mxu1 %v3018_v2  ;;  %v3026_v7 = vld [vmem:[#allocation7 + $0x28] ss:$20 sps:$4 sm:$0xff]   ;;  %v3032_v11 = vld [vmem:[#allocation7 + $0x50] ss:$20 sps:$4 sm:$0xff]  }
  0xbe   :  { %v3022_v5 = vld [vmem:[#allocation7 + $0x2c] ss:$20 sps:$4 sm:$0xff]   ;;  %987 = vmatpush1.bf16.msra.mxu0 %v3020_v3  ;;  %1069 = vmatpush1.bf16.msra.mxu1 %v3021_v4  ;;  %v3024_v6 = vld [vmem:[#allocation7 + $0x34] ss:$20 sps:$4 sm:$0xff]   ;;  %v3030_v10 = vld [vmem:[#allocation7 + $0x5c] ss:$20 sps:$4 sm:$0xff]  }
  0xbf   :  { %988 = vmatprep.subr.bf16.mxu0 %v3022_v5  ;;  %1070 = vmatprep.subr.bf16.mxu1 %v3024_v6  ;;  %v3028_v9 = vld [vmem:[#allocation7 + $0x54] ss:$20 sps:$4 sm:$0xff]   ;;  %v3033_v12 = vld [vmem:[#allocation7 + $0x58] ss:$20 sps:$4 sm:$0xff]   ;;  %v3034_v13 = vld [vmem:[#allocation7 + $0x7c] ss:$20 sps:$4 sm:$0xff]  }
  0xc0   :  { %v3036_v14 = vld [vmem:[#allocation7 + $0x84] ss:$20 sps:$4 sm:$0xff]   ;;  %v3039_v16 = vld [vmem:[#allocation7 + $0x80] ss:$20 sps:$4 sm:$0xff]   ;;  %v3045_v20 = vld [vmem:[#allocation7 + $0xa8] ss:$20 sps:$4 sm:$0xff]  }
  0xc1   :  { %v3038_v15 = vld [vmem:[#allocation7 + $0x78] ss:$20 sps:$4 sm:$0xff]   ;;  %v3044_v19 = vld [vmem:[#allocation7 + $0xa0] ss:$20 sps:$4 sm:$0xff]   ;;  %v3050_v23 = vld [vmem:[#allocation7 + $0xc8] ss:$20 sps:$4 sm:$0xff]  }
  0xc2   :  { %989 = vmatpush1.bf16.msra.mxu0 %v3026_v7  ;;  %1071 = vmatpush1.bf16.msra.mxu1 %v3027_v8  ;;  %v3040_v17 = vld [vmem:[#allocation7 + $0xa4] ss:$20 sps:$4 sm:$0xff]   ;;  %v3042_v18 = vld [vmem:[#allocation7 + $0xac] ss:$20 sps:$4 sm:$0xff]   ;;  %v3048_v22 = vld [vmem:[#allocation7 + $0xd4] ss:$20 sps:$4 sm:$0xff]  }
  0xc3   :  { %990 = vmatprep.subr.bf16.mxu0 %v3028_v9  ;;  %1072 = vmatprep.subr.bf16.mxu1 %v3030_v10  ;;  %v3046_v21 = vld [vmem:[#allocation7 + $0xcc] ss:$20 sps:$4 sm:$0xff]   ;;  %v3051_v24 = vld [vmem:[#allocation7 + $0xd0] ss:$20 sps:$4 sm:$0xff]   ;;  %v3052_v25 = vld [vmem:[#allocation7 + $0xf4] ss:$20 sps:$4 sm:$0xff]  }
  0xc4   :  { %v3054_v26 = vld [vmem:[#allocation7 + $0xfc] ss:$20 sps:$4 sm:$0xff]   ;;  %v3057_v28 = vld [vmem:[#allocation7 + $0xf8] ss:$20 sps:$4 sm:$0xff]   ;;  %v3063_v32 = vld [vmem:[#allocation7 + $0x120] ss:$20 sps:$4 sm:$0xff]  }
  0xc5   :  { %v3056_v27 = vld [vmem:[#allocation7 + $0xf0] ss:$20 sps:$4 sm:$0xff]   ;;  %v3062_v31 = vld [vmem:[#allocation7 + $0x118] ss:$20 sps:$4 sm:$0xff]   ;;  %v3068_v35 = vld [vmem:[#allocation7 + $0x140] ss:$20 sps:$4 sm:$0xff]  }
  0xc6   :  { %991 = vmatpush1.bf16.msra.mxu0 %v3032_v11  ;;  %1073 = vmatpush1.bf16.msra.mxu1 %v3033_v12  ;;  %v3058_v29 = vld [vmem:[#allocation7 + $0x11c] ss:$20 sps:$4 sm:$0xff]   ;;  %v3060_v30 = vld [vmem:[#allocation7 + $0x124] ss:$20 sps:$4 sm:$0xff]   ;;  %v3066_v34 = vld [vmem:[#allocation7 + $0x14c] ss:$20 sps:$4 sm:$0xff]  }
  0xc7   :  { %992 = vmatprep.subr.bf16.mxu0 %v3034_v13  ;;  %1074 = vmatprep.subr.bf16.mxu1 %v3036_v14  ;;  %v3064_v33 = vld [vmem:[#allocation7 + $0x144] ss:$20 sps:$4 sm:$0xff]   ;;  %v3069_v36 = vld [vmem:[#allocation7 + $0x148] ss:$20 sps:$4 sm:$0xff]   ;;  %v3070_v37 = vld [vmem:[#allocation7 + $0x16c] ss:$20 sps:$4 sm:$0xff]  }
  0xc8   :  { %v3072_v38 = vld [vmem:[#allocation7 + $0x174] ss:$20 sps:$4 sm:$0xff]   ;;  %v3075_v40 = vld [vmem:[#allocation7 + $0x170] ss:$20 sps:$4 sm:$0xff]   ;;  %v3081_v44 = vld [vmem:[#allocation7 + $0x198] ss:$20 sps:$4 sm:$0xff]  }
  0xc9   :  { %v3074_v39 = vld [vmem:[#allocation7 + $0x168] ss:$20 sps:$4 sm:$0xff]   ;;  %v3080_v43 = vld [vmem:[#allocation7 + $0x190] ss:$20 sps:$4 sm:$0xff]   ;;  %v3086_v48 = vld [vmem:[#allocation7 + $0x1b8] ss:$20 sps:$4 sm:$0xff]  }
  0xca   :  { %993 = vmatpush1.bf16.msra.mxu0 %v3038_v15  ;;  %1075 = vmatpush1.bf16.msra.mxu1 %v3039_v16  ;;  %v3076_v41 = vld [vmem:[#allocation7 + $0x194] ss:$20 sps:$4 sm:$0xff]   ;;  %v3078_v42 = vld [vmem:[#allocation7 + $0x19c] ss:$20 sps:$4 sm:$0xff]   ;;  %v3084_v46 = vld [vmem:[#allocation7 + $0x1c4] ss:$20 sps:$4 sm:$0xff]  }
  0xcb   :  { %994 = vmatprep.subr.bf16.mxu0 %v3040_v17  ;;  %1076 = vmatprep.subr.bf16.mxu1 %v3042_v18  ;;  %v3082_v45 = vld [vmem:[#allocation7 + $0x1bc] ss:$20 sps:$4 sm:$0xff]   ;;  %v187_v47 = vld [vmem:[%s4341_s24] sm:$0xff]  ;;  %v3096_v56 = vld [vmem:[#allocation7 + $0x214] ss:$20 sps:$4 sm:$0xff]   ;;  %s4342_s20 = sld [smem:[#allocation31_spill]] }
  0xcc   :  { %v3949_v49 = vpack.c.bf16 %v187_v47, %v187_v47  ;;  %v3087_v50 = vld [vmem:[#allocation7 + $0x1c0] ss:$20 sps:$4 sm:$0xff]   ;;  %v3088_v51 = vld [vmem:[#allocation7 + $0x1e4] ss:$20 sps:$4 sm:$0xff]   ;;  %v3093_v54 = vld [vmem:[#allocation7 + $0x1e8] ss:$20 sps:$4 sm:$0xff]  }
  0xcd   :  { %v3090_v52 = vld [vmem:[#allocation7 + $0x1ec] ss:$20 sps:$4 sm:$0xff]   ;;  %v3098_v57 = vld [vmem:[#allocation7 + $0x208] ss:$20 sps:$4 sm:$0xff]   ;;  %v3099_v58 = vld [vmem:[#allocation7 + $0x210] ss:$20 sps:$4 sm:$0xff]  }
  0xce   :  { %995 = vmatpush1.bf16.msra.mxu0 %v3044_v19  ;;  %1077 = vmatpush1.bf16.msra.mxu1 %v3045_v20  ;;  %v3092_v53 = vld [vmem:[#allocation7 + $0x1e0] ss:$20 sps:$4 sm:$0xff]   ;;  %v3102_v60 = vld [vmem:[#allocation7 + $0x23c] ss:$20 sps:$4 sm:$0xff]   ;;  %v3105_v62 = vld [vmem:[#allocation7 + $0x238] ss:$20 sps:$4 sm:$0xff]  }
  0xcf   :  { %996 = vmatprep.subr.bf16.mxu0 %v3046_v21  ;;  %1078 = vmatprep.subr.bf16.mxu1 %v3048_v22  ;;  %v3094_v55 = vld [vmem:[#allocation7 + $0x20c] ss:$20 sps:$4 sm:$0xff]   ;;  %v3100_v59 = vld [vmem:[#allocation7 + $0x234] ss:$20 sps:$4 sm:$0xff]   ;;  %v3104_v61 = vld [vmem:[#allocation7 + $0x230] ss:$20 sps:$4 sm:$0xff]  }
  0xd0   :  { %1018 = vmatprep.mubr.bf16.mxu0 %v3949_v49  ;;  %1100 = vmatprep.mubr.bf16.mxu1 %v3949_v49  ;;  %v3106_v63 = vld [vmem:[#allocation7 + $0x25c] ss:$20 sps:$4 sm:$0xff]   ;;  %v3108_v1 = vld [vmem:[#allocation7 + $0x264] ss:$20 sps:$4 sm:$0xff]   ;;  %v3111_v3 = vld [vmem:[#allocation7 + $0x260] ss:$20 sps:$4 sm:$0xff]  }
  0xd1   :  { %v3110_v2 = vld [vmem:[#allocation7 + $0x258] ss:$20 sps:$4 sm:$0xff]   ;;  %v186_v4 = vld [vmem:[%s4342_s20] sm:$0xff]  ;;  %v3115_v9 = vld [vmem:[#allocation7 + $0x288] ss:$20 sps:$4 sm:$0xff]   ;;  %vm3702_vm0 = vmmov 0  }
  0xd2   :  { %997 = vmatpush1.bf16.msra.mxu0 %v3050_v23  ;;  %1079 = vmatpush1.bf16.msra.mxu1 %v3051_v24  ;;  %v3114_v5 = vld [vmem:[#allocation7 + $0x284] ss:$20 sps:$4 sm:$0xff]   ;;  %v3117_v6 = vld [vmem:[#allocation7 + $0x28c] ss:$20 sps:$4 sm:$0xff]   ;;  %v3956_v7 = vpack.c.bf16 %v186_v4, %v186_v4  ;;  %v3123_v11 = vld [vmem:[#allocation7 + $0x2b4] ss:$20 sps:$4 sm:$0xff]  }
  0xd3   :  { %998 = vmatprep.subr.bf16.mxu0 %v3052_v25  ;;  %1080 = vmatprep.subr.bf16.mxu1 %v3054_v26  ;;  %v3112_v8 = vld [vmem:[#allocation7 + $0x280] ss:$20 sps:$4 sm:$0xff]   ;;  %v3118_v12 = vld [vmem:[#allocation7 + $0x2a8] ss:$20 sps:$4 sm:$0xff]   ;;  %v3121_v13 = vld [vmem:[#allocation7 + $0x2b0] ss:$20 sps:$4 sm:$0xff]  }
  0xd4   :  { %v3120_v10 = vld [vmem:[#allocation7 + $0x2ac] ss:$20 sps:$4 sm:$0xff]   ;;  %v3126_v14 = vld [vmem:[#allocation7 + $0x2d4] ss:$20 sps:$4 sm:$0xff]   ;;  %v3129_v15 = vld [vmem:[#allocation7 + $0x2dc] ss:$20 sps:$4 sm:$0xff]  }
  0xd5   :  { %v3124_v16 = vld [vmem:[#allocation7 + $0x2d0] ss:$20 sps:$4 sm:$0xff]   ;;  %v3127_v17 = vld [vmem:[#allocation7 + $0x2d8] ss:$20 sps:$4 sm:$0xff]   ;;  %v3133_v21 = vld [vmem:[#allocation7 + $0x300] ss:$20 sps:$4 sm:$0xff]  }
  0xd6   :  { %999 = vmatpush1.bf16.msra.mxu0 %v3056_v27  ;;  %1081 = vmatpush1.bf16.msra.mxu1 %v3057_v28  ;;  %v3132_v18 = vld [vmem:[#allocation7 + $0x2fc] ss:$20 sps:$4 sm:$0xff]   ;;  %v3135_v19 = vld [vmem:[#allocation7 + $0x304] ss:$20 sps:$4 sm:$0xff]   ;;  %v3141_v23 = vld [vmem:[#allocation7 + $0x32c] ss:$20 sps:$4 sm:$0xff]  }
  0xd7   :  { %1000 = vmatprep.subr.bf16.mxu0 %v3058_v29  ;;  %1082 = vmatprep.subr.bf16.mxu1 %v3060_v30  ;;  %v3130_v20 = vld [vmem:[#allocation7 + $0x2f8] ss:$20 sps:$4 sm:$0xff]   ;;  %v3136_v24 = vld [vmem:[#allocation7 + $0x320] ss:$20 sps:$4 sm:$0xff]   ;;  %v3139_v25 = vld [vmem:[#allocation7 + $0x328] ss:$20 sps:$4 sm:$0xff]  }
  0xd8   :  { %v3138_v22 = vld [vmem:[#allocation7 + $0x324] ss:$20 sps:$4 sm:$0xff]   ;;  %v3147_v26 = vld [vmem:[#allocation7 + $0x354] ss:$20 sps:$4 sm:$0xff]   ;;  %v3153_v30 = vld [vmem:[#allocation7 + $0x37c] ss:$20 sps:$4 sm:$0xff]  }
  0xd9   :  { %v3142_v27 = vld [vmem:[#allocation7 + $0x348] ss:$20 sps:$4 sm:$0xff]   ;;  %v3145_v28 = vld [vmem:[#allocation7 + $0x350] ss:$20 sps:$4 sm:$0xff]   ;;  %v3167_v47 = vld [vmem:[#allocation7 + $0x60] ss:$20 sps:$4 sm:$0xff]  }
  0xda   :  { %1001 = vmatpush1.bf16.msra.mxu0 %v3062_v31  ;;  %1083 = vmatpush1.bf16.msra.mxu1 %v3063_v32  ;;  %v3150_v29 = vld [vmem:[#allocation7 + $0x374] ss:$20 sps:$4 sm:$0xff]   ;;  %v3148_v31 = vld [vmem:[#allocation7 + $0x370] ss:$20 sps:$4 sm:$0xff]   ;;  %v3151_v32 = vld [vmem:[#allocation7 + $0x378] ss:$20 sps:$4 sm:$0xff]  }
  0xdb   :  { %1002 = vmatprep.subr.bf16.mxu0 %v3064_v33  ;;  %1084 = vmatprep.subr.bf16.mxu1 %v3066_v34  ;;  %v3156_v33 = vld [vmem:[#allocation7 + $0x39c] ss:$20 sps:$4 sm:$0xff]   ;;  %v3159_v34 = vld [vmem:[#allocation7 + $0x3a4] ss:$20 sps:$4 sm:$0xff]   ;;  %vm2046_vm1 = vcmask 1041409   ;;  %vm2049_vm2 = vcmask 1042434  }
  0xdc   :  { %v3187_v4 = vld [vmem:[#allocation10 + $0x10] ss:$8 sps:$4 sm:$0xff]   ;;  %vm2150_vm3 = vcmask 7168   ;;  %vm2052_vm4 = vcmask 1043459   ;;  %vm2055_vm5 = vcmask 1044484   ;;  %vm2058_vm6 = vcmask 1045509  }
  0xdd   :  { %vm2061_vm7 = vcmask 1046534   ;;  %vm2064_vm8 = vcmask 1047559  }
  0xde   :  { %1003 = vmatpush1.bf16.msra.mxu0 %v3068_v35  ;;  %1085 = vmatpush1.bf16.msra.mxu1 %v3069_v36  ;;  %v3154_v35 = vld [vmem:[#allocation7 + $0x398] ss:$20 sps:$4 sm:$0xff]   ;;  %v3157_v36 = vld [vmem:[#allocation7 + $0x3a0] ss:$20 sps:$4 sm:$0xff]  }
  0xdf   :  { %1004 = vmatprep.subr.bf16.mxu0 %v3070_v37  ;;  %1086 = vmatprep.subr.bf16.mxu1 %v3072_v38  ;;  %v184_v37 = vld [vmem:[%s4325_s4] sm:$0xff] }
  0xe0   :  { %v3160_v38 = vld [vmem:[#allocation7 + $0x150] ss:$20 sps:$4 sm:$0xff]  }
  0xe2   :  { %1005 = vmatpush1.bf16.msra.mxu0 %v3074_v39  ;;  %1087 = vmatpush1.bf16.msra.mxu1 %v3075_v40  ;;  %v3161_v39 = vld [vmem:[#allocation7 + $0x10] ss:$20 sps:$4 sm:$0xff]  }
  0xe3   :  { %1006 = vmatprep.subr.bf16.mxu0 %v3076_v41  ;;  %1088 = vmatprep.subr.bf16.mxu1 %v3078_v42  ;;  %v3162_v40 = vld [vmem:[#allocation7 + $0x290] ss:$20 sps:$4 sm:$0xff]   ;;  %v190_v41 = vpack.c.bf16 %v184_v37, %v184_v37  ;;  %v3163_v42 = vld [vmem:[#allocation7 + $0x178] ss:$20 sps:$4 sm:$0xff]  }
  0xe4   :  { %v3238_v37 = vld [vmem:[#allocation11 + $0x20] ss:$8 sps:$4 sm:$0xff]  }
  0xe6   :  { %1007 = vmatpush1.bf16.msra.mxu0 %v3080_v43  ;;  %1089 = vmatpush1.bf16.msra.mxu1 %v3081_v44  ;;  %v3701_v43 = vmov 0.0   ;;  %v3164_v44 = vld [vmem:[#allocation7 + $0x38] ss:$20 sps:$4 sm:$0xff]  }
  0xe7   :  { %1008 = vmatprep.subr.bf16.mxu0 %v3082_v45  ;;  %1090 = vmatprep.subr.bf16.mxu1 %v3084_v46  ;;  %v3165_v45 = vld [vmem:[#allocation7 + $0x2b8] ss:$20 sps:$4 sm:$0xff]   ;;  %v3166_v46 = vld [vmem:[#allocation7 + $0x1a0] ss:$20 sps:$4 sm:$0xff]  }
  0xea   :  { %1009 = vmatpush1.bf16.msra.mxu0 %v3086_v48  ;;  %1091 = vmatpush1.bf16.msra.mxu1 %v3087_v50  ;;  %v3168_v48 = vld [vmem:[#allocation7 + $0x2e0] ss:$20 sps:$4 sm:$0xff]   ;;  %v3169_v50 = vld [vmem:[#allocation7 + $0x1c8] ss:$20 sps:$4 sm:$0xff]  }
  0xeb   :  { %1010 = vmatprep.subr.bf16.mxu0 %v3088_v51  ;;  %1092 = vmatprep.subr.bf16.mxu1 %v3090_v52  ;;  %v3170_v51 = vld [vmem:[#allocation7 + $0x88] ss:$20 sps:$4 sm:$0xff]  }
  0xec   :  { %v3171_v52 = vld [vmem:[#allocation7 + $0x308] ss:$20 sps:$4 sm:$0xff]  }
  0xee   :  { %1011 = vmatpush1.bf16.msra.mxu0 %v3092_v53  ;;  %1093 = vmatpush1.bf16.msra.mxu1 %v3093_v54  ;;  %v3172_v53 = vld [vmem:[#allocation7 + $0x1f0] ss:$20 sps:$4 sm:$0xff]  }
  0xef   :  { %1012 = vmatprep.subr.bf16.mxu0 %v3094_v55  ;;  %1094 = vmatprep.subr.bf16.mxu1 %v3096_v56  ;;  %v3173_v54 = vld [vmem:[#allocation7 + $0xb0] ss:$20 sps:$4 sm:$0xff]   ;;  %v3175_v55 = vld [vmem:[#allocation7 + $0x218] ss:$20 sps:$4 sm:$0xff]  }
  0xf0   :  { %v3176_v56 = vld [vmem:[#allocation7 + $0xd8] ss:$20 sps:$4 sm:$0xff]  }
  0xf2   :  { %1013 = vmatpush1.bf16.msra.mxu0 %v3098_v57  ;;  %1095 = vmatpush1.bf16.msra.mxu1 %v3099_v58  ;;  %v3177_v57 = vld [vmem:[#allocation7 + $0x358] ss:$20 sps:$4 sm:$0xff]   ;;  %v3178_v58 = vld [vmem:[#allocation7 + $0x240] ss:$20 sps:$4 sm:$0xff]  }
  0xf3   :  { %1014 = vmatprep.subr.bf16.mxu0 %v3100_v59  ;;  %1096 = vmatprep.subr.bf16.mxu1 %v3102_v60  ;;  %v3179_v59 = vld [vmem:[#allocation7 + $0x100] ss:$20 sps:$4 sm:$0xff]  }
  0xf4   :  { %v3180_v60 = vld [vmem:[#allocation7 + $0x380] ss:$20 sps:$4 sm:$0xff]  }
  0xf6   :  { %1015 = vmatpush1.bf16.msra.mxu0 %v3104_v61  ;;  %1097 = vmatpush1.bf16.msra.mxu1 %v3105_v62  ;;  %v3181_v61 = vld [vmem:[#allocation7 + $0x268] ss:$20 sps:$4 sm:$0xff]  }
  0xf7   :  { %1016 = vmatprep.subr.bf16.mxu0 %v3106_v63  ;;  %1098 = vmatprep.subr.bf16.mxu1 %v3108_v1  ;;  %v3182_v62 = vld [vmem:[#allocation7 + $0x128] ss:$20 sps:$4 sm:$0xff]  }
  0xf8   :  { %v3183_v63 = vld [vmem:[#allocation7 + $0x3a8] ss:$20 sps:$4 sm:$0xff]  }
  0xf9   :  { %v3186_v1 = vld [vmem:[#allocation10 + $0x4] ss:$8 sps:$4 sm:$0xff]  }
  0xfa   :  { %1017 = vmatpush1.bf16.msra.mxu0 %v3110_v2  ;;  %1099 = vmatpush1.bf16.msra.mxu1 %v3111_v3  ;;  %v3184_v2 = vld [vmem:[#allocation10] ss:$8 sps:$4 sm:$0xff]   ;;  %v3189_v3 = vld [vmem:[#allocation10 + $0x14] ss:$8 sps:$4 sm:$0xff]  }
  0xfb   :  { %1027 = vmatprep.subr.bf16.mxu0 %v3114_v5  ;;  %1109 = vmatprep.subr.bf16.mxu1 %v3117_v6  ;;  %v3192_v5 = vld [vmem:[#allocation10 + $0x24] ss:$8 sps:$4 sm:$0xff]   ;;  %v3190_v6 = vld [vmem:[#allocation10 + $0x20] ss:$8 sps:$4 sm:$0xff]  }
  0xfd   :  { %1019 = vmatmul.mubr.bf16.vlgmr.msra.gmra.mrb[0].mxu0 %v3956_v7  ;;  %1101 = vmatmul.mubr.bf16.vlgmr.msra.gmra.mrb[0].mxu1 %v3956_v7 }
  0xfe   :  { %1028 = vmatpush1.bf16.msra.mxu0 %v3112_v8  ;;  %1110 = vmatpush1.bf16.msra.mxu1 %v3115_v9  ;;  %v3195_v8 = vld [vmem:[#allocation10 + $0x34] ss:$8 sps:$4 sm:$0xff]   ;;  %v3193_v9 = vld [vmem:[#allocation10 + $0x30] ss:$8 sps:$4 sm:$0xff]  }
  0xff   :  { %1029 = vmatprep.subr.bf16.mxu0 %v3120_v10  ;;  %1111 = vmatprep.subr.bf16.mxu1 %v3123_v11  ;;  %v3198_v10 = vld [vmem:[#allocation10 + $0x44] ss:$8 sps:$4 sm:$0xff]   ;;  %v3196_v11 = vld [vmem:[#allocation10 + $0x40] ss:$8 sps:$4 sm:$0xff]  }
 0x100   :  { %1059 = vmatprep.mubr.bf16.mxu0 %v3700_v0  ;;  %1141 = vmatprep.mubr.bf16.mxu1 %v3700_v0  ;;  %v3144_v0 = vld [vmem:[#allocation7 + $0x34c] ss:$20 sps:$4 sm:$0xff]  }
 0x102   :  { %1030 = vmatpush1.bf16.msra.mxu0 %v3118_v12  ;;  %1112 = vmatpush1.bf16.msra.mxu1 %v3121_v13  ;;  %v3199_v12 = vld [vmem:[#allocation10 + $0x50] ss:$8 sps:$4 sm:$0xff]   ;;  %v3204_v13 = vld [vmem:[#allocation10 + $0x64] ss:$8 sps:$4 sm:$0xff]  }
 0x103   :  { %1031 = vmatprep.subr.bf16.mxu0 %v3126_v14  ;;  %1113 = vmatprep.subr.bf16.mxu1 %v3129_v15  ;;  %v3202_v14 = vld [vmem:[#allocation10 + $0x60] ss:$8 sps:$4 sm:$0xff]   ;;  %v3207_v15 = vld [vmem:[#allocation10 + $0x74] ss:$8 sps:$4 sm:$0xff]  }
 0x106   :  { %1032 = vmatpush1.bf16.msra.mxu0 %v3124_v16  ;;  %1114 = vmatpush1.bf16.msra.mxu1 %v3127_v17  ;;  %v3205_v16 = vld [vmem:[#allocation10 + $0x70] ss:$8 sps:$4 sm:$0xff]   ;;  %v3210_v17 = vld [vmem:[#allocation10 + $0x84] ss:$8 sps:$4 sm:$0xff]  }
 0x107   :  { %1033 = vmatprep.subr.bf16.mxu0 %v3132_v18  ;;  %1115 = vmatprep.subr.bf16.mxu1 %v3135_v19  ;;  %v3208_v18 = vld [vmem:[#allocation10 + $0x80] ss:$8 sps:$4 sm:$0xff]   ;;  %v3213_v19 = vld [vmem:[#allocation10 + $0x94] ss:$8 sps:$4 sm:$0xff]  }
 0x10a   :  { %1034 = vmatpush1.bf16.msra.mxu0 %v3130_v20  ;;  %1116 = vmatpush1.bf16.msra.mxu1 %v3133_v21  ;;  %v3211_v20 = vld [vmem:[#allocation10 + $0x90] ss:$8 sps:$4 sm:$0xff]   ;;  %v3216_v21 = vld [vmem:[#allocation10 + $0xa4] ss:$8 sps:$4 sm:$0xff]  }
 0x10b   :  { %1035 = vmatprep.subr.bf16.mxu0 %v3138_v22  ;;  %1117 = vmatprep.subr.bf16.mxu1 %v3141_v23  ;;  %v3214_v22 = vld [vmem:[#allocation10 + $0xa0] ss:$8 sps:$4 sm:$0xff]   ;;  %v3219_v23 = vld [vmem:[#allocation10 + $0xb4] ss:$8 sps:$4 sm:$0xff]  }
 0x10e   :  { %1036 = vmatpush1.bf16.msra.mxu0 %v3136_v24  ;;  %1118 = vmatpush1.bf16.msra.mxu1 %v3139_v25  ;;  %v3217_v24 = vld [vmem:[#allocation10 + $0xb0] ss:$8 sps:$4 sm:$0xff]   ;;  %v3222_v25 = vld [vmem:[#allocation10 + $0xc4] ss:$8 sps:$4 sm:$0xff]  }
 0x10f   :  { %1037 = vmatprep.subr.bf16.mxu0 %v3144_v0  ;;  %1119 = vmatprep.subr.bf16.mxu1 %v3147_v26  ;;  %v3220_v0 = vld [vmem:[#allocation10 + $0xc0] ss:$8 sps:$4 sm:$0xff]   ;;  %v3225_v26 = vld [vmem:[#allocation10 + $0xd4] ss:$8 sps:$4 sm:$0xff]  }
 0x112   :  { %1038 = vmatpush1.bf16.msra.mxu0 %v3142_v27  ;;  %1120 = vmatpush1.bf16.msra.mxu1 %v3145_v28  ;;  %v3223_v27 = vld [vmem:[#allocation10 + $0xd0] ss:$8 sps:$4 sm:$0xff]   ;;  %v3228_v28 = vld [vmem:[#allocation10 + $0xe4] ss:$8 sps:$4 sm:$0xff]  }
 0x113   :  { %1039 = vmatprep.subr.bf16.mxu0 %v3150_v29  ;;  %1121 = vmatprep.subr.bf16.mxu1 %v3153_v30  ;;  %v3226_v29 = vld [vmem:[#allocation10 + $0xe0] ss:$8 sps:$4 sm:$0xff]   ;;  %v3231_v30 = vld [vmem:[#allocation10 + $0xf4] ss:$8 sps:$4 sm:$0xff]  }
 0x116   :  { %1040 = vmatpush1.bf16.msra.mxu0 %v3148_v31  ;;  %1122 = vmatpush1.bf16.msra.mxu1 %v3151_v32  ;;  %v3229_v31 = vld [vmem:[#allocation10 + $0xf0] ss:$8 sps:$4 sm:$0xff]   ;;  %v3232_v32 = vld [vmem:[#allocation11] ss:$8 sps:$4 sm:$0xff]  }
 0x117   :  { %1041 = vmatprep.subr.bf16.mxu0 %v3156_v33  ;;  %1123 = vmatprep.subr.bf16.mxu1 %v3159_v34  ;;  %v3234_v33 = vld [vmem:[#allocation11 + $0x4] ss:$8 sps:$4 sm:$0xff]   ;;  %v3237_v34 = vld [vmem:[#allocation11 + $0x14] ss:$8 sps:$4 sm:$0xff]  }
 0x11a   :  { %1042 = vmatpush1.bf16.msra.mxu0 %v3154_v35  ;;  %1124 = vmatpush1.bf16.msra.mxu1 %v3157_v36  ;;  %v3235_v35 = vld [vmem:[#allocation11 + $0x10] ss:$8 sps:$4 sm:$0xff]   ;;  %v3240_v36 = vld [vmem:[#allocation11 + $0x24] ss:$8 sps:$4 sm:$0xff]  }
 0x11b   :  { %2899 = vmatprep.subr.bf16.mxu0 %v3160_v38  ;;  %2939 = vmatprep.subr.bf16.mxu1 %v3701_v43  ;;  %v3243_v38 = vld [vmem:[#allocation11 + $0x34] ss:$8 sps:$4 sm:$0xff]  }
 0x11d   :  { %1060 = vmatmul.mubr.bf16.vlgmr.msra.gmra.mrb[0].mxu0 %v190_v41  ;;  %1142 = vmatmul.mubr.bf16.vlgmr.msra.gmra.mrb[0].mxu1 %v190_v41 }
 0x11e   :  { %2900 = vmatpush3.bf16.msra.mxu0 %v3161_v39  ;;  %2940 = vmatpush3.bf16.msra.mxu1 %v3162_v40  ;;  %v3241_v39 = vld [vmem:[#allocation11 + $0x30] ss:$8 sps:$4 sm:$0xff]   ;;  %v3246_v40 = vld [vmem:[#allocation11 + $0x44] ss:$8 sps:$4 sm:$0xff]  }
 0x11f   :  { %2901 = vmatprep.subr.bf16.mxu0 %v3163_v42  ;;  %2941 = vmatprep.subr.bf16.mxu1 %v3701_v43  ;;  %v3249_v42 = vld [vmem:[#allocation11 + $0x54] ss:$8 sps:$4 sm:$0xff]  }
 0x120   :  { %1182 = vmatprep.mubr.bf16.mxu0 %v3949_v49  ;;  %2955 = vmatprep.mubr.msk.bf16.mxu1 %vm3702_vm0, %v3701_v43  ;;  %v3174_v49 = vld [vmem:[#allocation7 + $0x330] ss:$20 sps:$4 sm:$0xff]  }
 0x122   :  { %2902 = vmatpush3.bf16.msra.mxu0 %v3164_v44  ;;  %2942 = vmatpush3.bf16.msra.mxu1 %v3165_v45  ;;  %v3247_v44 = vld [vmem:[#allocation11 + $0x50] ss:$8 sps:$4 sm:$0xff]   ;;  %v3252_v45 = vld [vmem:[#allocation11 + $0x64] ss:$8 sps:$4 sm:$0xff]  }
 0x123   :  { %2903 = vmatprep.subr.bf16.mxu0 %v3166_v46  ;;  %2943 = vmatprep.subr.bf16.mxu1 %v3701_v43  ;;  %v3250_v46 = vld [vmem:[#allocation11 + $0x60] ss:$8 sps:$4 sm:$0xff]  }
 0x126   :  { %2904 = vmatpush3.bf16.msra.mxu0 %v3167_v47  ;;  %2944 = vmatpush3.bf16.msra.mxu1 %v3168_v48  ;;  %v3255_v47 = vld [vmem:[#allocation11 + $0x74] ss:$8 sps:$4 sm:$0xff]   ;;  %v3253_v48 = vld [vmem:[#allocation11 + $0x70] ss:$8 sps:$4 sm:$0xff]  }
 0x127   :  { %2905 = vmatprep.subr.bf16.mxu0 %v3169_v50  ;;  %2945 = vmatprep.subr.bf16.mxu1 %v3701_v43  ;;  %v3258_v50 = vld [vmem:[#allocation11 + $0x84] ss:$8 sps:$4 sm:$0xff]  }
 0x12a   :  { %2906 = vmatpush3.bf16.msra.mxu0 %v3170_v51  ;;  %2946 = vmatpush3.bf16.msra.mxu1 %v3171_v52  ;;  %v3256_v51 = vld [vmem:[#allocation11 + $0x80] ss:$8 sps:$4 sm:$0xff]   ;;  %v3261_v52 = vld [vmem:[#allocation11 + $0x94] ss:$8 sps:$4 sm:$0xff]  }
 0x12b   :  { %2907 = vmatprep.subr.bf16.mxu0 %v3172_v53  ;;  %2947 = vmatprep.subr.bf16.mxu1 %v3701_v43  ;;  %v3259_v53 = vld [vmem:[#allocation11 + $0x90] ss:$8 sps:$4 sm:$0xff]  }
 0x12e   :  { %2908 = vmatpush3.bf16.msra.mxu0 %v3173_v54  ;;  %2948 = vmatpush3.bf16.msra.mxu1 %v3174_v49  ;;  %v3264_v54 = vld [vmem:[#allocation11 + $0xa4] ss:$8 sps:$4 sm:$0xff]   ;;  %v3262_v49 = vld [vmem:[#allocation11 + $0xa0] ss:$8 sps:$4 sm:$0xff]  }
 0x12f   :  { %2909 = vmatprep.subr.bf16.mxu0 %v3175_v55  ;;  %2949 = vmatprep.subr.bf16.mxu1 %v3701_v43  ;;  %v3267_v55 = vld [vmem:[#allocation11 + $0xb4] ss:$8 sps:$4 sm:$0xff]  }
 0x132   :  { %2910 = vmatpush3.bf16.msra.mxu0 %v3176_v56  ;;  %2950 = vmatpush3.bf16.msra.mxu1 %v3177_v57  ;;  %v337_v56 = vlaneseq  ;;  %v3265_v57 = vld [vmem:[#allocation11 + $0xb0] ss:$8 sps:$4 sm:$0xff]  }
 0x133   :  { %2911 = vmatprep.subr.bf16.mxu0 %v3178_v58  ;;  %2951 = vmatprep.subr.bf16.mxu1 %v3701_v43 }
 0x134   :  { %v3978_v58 = vshrl.u32 %v337_v56, 7  ;;  %v3270_v56 = vld [vmem:[#allocation11 + $0xc4] ss:$8 sps:$4 sm:$0xff]  }
 0x136   :  { %2912 = vmatpush3.bf16.msra.mxu0 %v3179_v59  ;;  %2952 = vmatpush3.bf16.msra.mxu1 %v3180_v60  ;;  %v3981_v59 = vsub.s32 0, %v3978_v58  ;;  %v335_v60 = vld [vmem:[#allocation8] sm:$0x1f] }
 0x137   :  { %2913 = vmatprep.subr.bf16.mxu0 %v3181_v61  ;;  %2953 = vmatprep.subr.bf16.mxu1 %v3701_v43  ;;  %v3984_v61 = vsub.s32 1, %v3978_v58 }
 0x13a   :  { %2914 = vmatpush3.bf16.msra.mxu0 %v3182_v62  ;;  %2954 = vmatpush3.bf16.msra.mxu1 %v3183_v63  ;;  %v340_v62 = vrot.slane %v335_v60, %v3981_v59  ;;  %v344_v63 = vrot.slane %v335_v60, %v3984_v61 }
 0x13b   :  { %1469 = vmatprep.subr.bf16.mxu0 %v3186_v1  ;;  %1718 = vmatprep.subr.bf16.mxu1 %v3234_v33 }
 0x13d   :  { %1183 = vmatmul.mubr.bf16.vlgmr.msra.gmra.mrb[4].mxu0 %v3956_v7  ;;  %2956 = vmatmul.mubr.bf16.vlgmr.msra.gmra.mrb[4].mxu1 %v190_v41  ;;  %v3201_v7 = vld [vmem:[#allocation10 + $0x54] ss:$8 sps:$4 sm:$0xff]   ;;  %v3244_v41 = vld [vmem:[#allocation11 + $0x40] ss:$8 sps:$4 sm:$0xff]  }
 0x13e   :  { %1470 = vmatpush1.bf16.msra.mxu0 %v3184_v2  ;;  %1719 = vmatpush1.bf16.msra.mxu1 %v3232_v32 }
 0x13f   :  { %1471 = vmatprep.subr.bf16.mxu0 %v3189_v3  ;;  %1720 = vmatprep.subr.bf16.mxu1 %v3237_v34 }
 0x142   :  { %1472 = vmatpush1.bf16.msra.mxu0 %v3187_v4  ;;  %1721 = vmatpush1.bf16.msra.mxu1 %v3235_v35  ;;  %v347_v4 = vsub.s32 2, %v3978_v58 }
 0x143   :  { %1473 = vmatprep.subr.bf16.mxu0 %v3192_v5  ;;  %1722 = vmatprep.subr.bf16.mxu1 %v3240_v36 }
 0x146   :  { %1474 = vmatpush1.bf16.msra.mxu0 %v3190_v6  ;;  %1723 = vmatpush1.bf16.msra.mxu1 %v3238_v37 }
 0x147   :  { %1475 = vmatprep.subr.bf16.mxu0 %v3195_v8  ;;  %1724 = vmatprep.subr.bf16.mxu1 %v3243_v38 }
 0x14a   :  { %1476 = vmatpush1.bf16.msra.mxu0 %v3193_v9  ;;  %1725 = vmatpush1.bf16.msra.mxu1 %v3241_v39 }
 0x14b   :  { %1477 = vmatprep.subr.bf16.mxu0 %v3198_v10  ;;  %1726 = vmatprep.subr.bf16.mxu1 %v3246_v40 }
 0x14e   :  { %1478 = vmatpush1.bf16.msra.mxu0 %v3196_v11  ;;  %1727 = vmatpush1.bf16.msra.mxu1 %v3244_v41 }
 0x14f   :  { %1479 = vmatprep.subr.bf16.mxu0 %v3201_v7  ;;  %1728 = vmatprep.subr.bf16.mxu1 %v3249_v42 }
 0x152   :  { %1480 = vmatpush1.bf16.msra.mxu0 %v3199_v12  ;;  %1729 = vmatpush1.bf16.msra.mxu1 %v3247_v44 }
 0x153   :  { %1481 = vmatprep.subr.bf16.mxu0 %v3204_v13  ;;  %1730 = vmatprep.subr.bf16.mxu1 %v3252_v45 }
 0x156   :  { %1482 = vmatpush1.bf16.msra.mxu0 %v3202_v14  ;;  %1731 = vmatpush1.bf16.msra.mxu1 %v3250_v46  ;;  %v351_v14 = vsub.s32 3, %v3978_v58 }
 0x157   :  { %1483 = vmatprep.subr.bf16.mxu0 %v3207_v15  ;;  %1732 = vmatprep.subr.bf16.mxu1 %v3255_v47  ;;  %v348_v15 = vrot.slane %v335_v60, %v347_v4  ;;  %v1297_v4 = vld [vmem:[%s4330_s9] sm:$0x3]  ;;  %s3704_s9 = smov [#allocation20]  }
 0x158   :  { %s2670_s23 = sshll.u32 %s3704_s9, 4  ;;  %s2671_s23 = int_to_ptr.vmem [resolvable:$true] %s2670_s23 }
 0x159   :  { %s3602_s26 = scalar_lea.vmem %s2671_s23, 128  ;;  %p3607_p11 = scmp.lt.s32.totalorder %s2671_s23, %s2671_s23 }
 0x15a   :  { %1484 = vmatpush1.bf16.msra.mxu0 %v3205_v16  ;;  %1733 = vmatpush1.bf16.msra.mxu1 %v3253_v48  ;;  %v352_v16 = vrot.slane %v335_v60, %v351_v14  ;;  %p3603_p10 = scmp.ne.s32.totalorder %s2671_s23, %s3602_s26  ;;  %p3608_p12 = scmp.lt.s32.totalorder %s3602_s26, %s3602_s26 }
 0x15b   :  { %1485 = vmatprep.subr.bf16.mxu0 %v3210_v17  ;;  %1734 = vmatprep.subr.bf16.mxu1 %v3258_v50 }
 0x15c   :  { %p3609_p13 = por %p3608_p12, %p3607_p11 }
 0x15e   :  { %1486 = vmatpush1.bf16.msra.mxu0 %v3208_v18  ;;  %1735 = vmatpush1.bf16.msra.mxu1 %v3256_v51  ;;  %p3610_p0 = pnand %p3609_p13, %p3603_p10 }
 0x15f   :  { %1487 = vmatprep.subr.bf16.mxu0 %v3213_v19  ;;  %1736 = vmatprep.subr.bf16.mxu1 %v3261_v52 }
 0x162   :  { %1488 = vmatpush1.bf16.msra.mxu0 %v3211_v20  ;;  %1737 = vmatpush1.bf16.msra.mxu1 %v3259_v53 }
 0x163   :  { %1489 = vmatprep.subr.bf16.mxu0 %v3216_v21  ;;  %1738 = vmatprep.subr.bf16.mxu1 %v3264_v54 }
 0x166   :  { %1490 = vmatpush1.bf16.msra.mxu0 %v3214_v22  ;;  %1739 = vmatpush1.bf16.msra.mxu1 %v3262_v49 }
 0x167   :  { %1491 = vmatprep.subr.bf16.mxu0 %v3219_v23  ;;  %1740 = vmatprep.subr.bf16.mxu1 %v3267_v55 }
 0x16a   :  { %1492 = vmatpush1.bf16.msra.mxu0 %v3217_v24  ;;  %1741 = vmatpush1.bf16.msra.mxu1 %v3265_v57  ;;  %v3268_v57 = vld [vmem:[#allocation11 + $0xc0] ss:$8 sps:$4 sm:$0xff]  }
 0x16b   :  { %1493 = vmatprep.subr.bf16.mxu0 %v3222_v25  ;;  %1742 = vmatprep.subr.bf16.mxu1 %v3270_v56  ;;  %v1780_v56 = vld [vmem:[#allocation5 + $0x48] sm:$0xff] }
 0x16e   :  { %1494 = vmatpush1.bf16.msra.mxu0 %v3220_v0  ;;  %1743 = vmatpush1.bf16.msra.mxu1 %v3268_v57 }
 0x16f   :  { %1495 = vmatprep.subr.bf16.mxu0 %v3225_v26  ;;  %v185_v26 = vld [vmem:[%s4326_s5] sm:$0xff] }
 0x172   :  { %1496 = vmatpush1.bf16.msra.mxu0 %v3223_v27  ;;  %v355_v27 = vsub.s32 4, %v3978_v58 }
 0x173   :  { %1497 = vmatprep.subr.bf16.mxu0 %v3228_v28 }
 0x174   :  { %v356_v33 = vrot.slane %v335_v60, %v355_v27  ;;  %v3271_v60 = vld [vmem:[#allocation11 + $0xd0] ss:$8 sps:$4 sm:$0xff]  }
 0x176   :  { %1498 = vmatpush1.bf16.msra.mxu0 %v3226_v29 }
 0x177   :  { %1499 = vmatprep.subr.bf16.mxu0 %v3231_v30 }
 0x17a   :  { %1500 = vmatpush1.bf16.msra.mxu0 %v3229_v31 }
 0x17b   :  { %2959 = vmatprep.subr.bf16.mxu0 %v3701_v43 }
 0x1f0   :  { %v1061_v1 = vpop.f32.mrb[0].mxu0  ;;  %v1143_v2 = vpop.f32.mrb[0].mxu1 }
 0x1f1   :  { %v2979_v3 = vadd.f32 %v1061_v1, %v340_v62  ;;  %v1063_v5 = vpop.f32.mrb[1].mxu0  ;;  %v1145_v6 = vpop.f32.mrb[1].mxu1  ;;  %v2981_v17 = vadd.f32 %v1143_v2, %v348_v15  ;;  %v3273_v62 = vld [vmem:[#allocation11 + $0xd4] ss:$8 sps:$4 sm:$0xff]   ;;  %v3274_v1 = vld [vmem:[#allocation11 + $0xe0] ss:$8 sps:$4 sm:$0xff]  }
 0x1f2   :  { %v2980_v8 = vadd.f32 %v1063_v5, %v344_v63  ;;  %v1065_v9 = vpop.f32.mrb[2].mxu0  ;;  %v1147_v10 = vpop.f32.mrb[2].mxu1  ;;  %v2982_v18 = vadd.f32 %v1145_v6, %v352_v16  ;;  %v3276_v63 = vld [vmem:[#allocation11 + $0xe4] ss:$8 sps:$4 sm:$0xff]   ;;  %1744 = vmatprep.subr.bf16.mxu1 %v3273_v62  ;;  %v3279_v2 = vld [vmem:[#allocation11 + $0xf4] ss:$8 sps:$4 sm:$0xff]   ;;  %v1306_v5 = vrot.slane %v1297_v4, %v3984_v61 }
 0x1f3   :  { %v2821_v11 = vmul.f32 -1.442695, %v2979_v3  ;;  %v1066_v7 = vpop.f32.mrb[3].mxu0  ;;  %v1148_v12 = vpop.f32.mrb[3].mxu1  ;;  %v2823_v19 = vmul.f32 -1.442695, %v2981_v17  ;;  %1745 = vmatpush1.bf16.msra.mxu1 %v3271_v60 }
 0x1f4   :  { %v2822_v13 = vmul.f32 -1.442695, %v2980_v8  ;;  %1746 = vmatprep.subr.bf16.mxu1 %v3276_v63  ;;  %v3277_v3 = vld [vmem:[#allocation11 + $0xf0] ss:$8 sps:$4 sm:$0xff]   ;;  %v1302_v7 = vrot.slane %v1297_v4, %v3981_v59  ;;  %v3703_v17 = vmov 1966171168  }
 0x1f5   :  { %3288 = vpow2.f32 %v2821_v11 }
 0x1f6   :  { %3290 = vpow2.f32 %v2822_v13 }
 0x1f7   :  { %3292 = vtanh.f32 %v2982_v18  ;;  %1747 = vmatpush1.bf16.msra.mxu1 %v3274_v1  ;;  %v1790_v18 = vunpack.c.l.s4 %v3703_v17  ;;  %v1777_v1 = vld [vmem:[#allocation5 + $0x30] sm:$0xff] }
 0x1f8   :  { %3294 = vpow2.f32 %v2823_v19  ;;  %1748 = vmatprep.subr.bf16.mxu1 %v3279_v2  ;;  %v1546_v19 = vld [vmem:[#allocation13] sm:$0x3]  ;;  %v1778_v2 = vld [vmem:[#allocation5 + $0x38] sm:$0xff] }
 0x1fb   :  { %1749 = vmatpush1.bf16.msra.mxu1 %v3277_v3 }
 0x1ff   :  { %v3289_v20 = vpop.eup %3288 }
 0x200   :  { %v1233_v21 = vadd.f32 1.0, %v3289_v20  ;;  %v3291_v22 = vpop.eup %3290  ;;  %v1791_v20 = vunpack.c.0.s8 %v1790_v18 }
 0x201   :  { %v1239_v23 = vadd.f32 1.0, %v3291_v22  ;;  %v3293_v24 = vpop.eup %3292  ;;  %v1555_v22 = vrot.slane %v1546_v19, %v3984_v61 }
 0x202   :  { %3296 = vrcp.f32 %v1233_v21  ;;  %v3295_v25 = vpop.eup %3294  ;;  %v1551_v21 = vrot.slane %v1546_v19, %v3981_v59 }
 0x203   :  { %3298 = vrcp.f32 %v1239_v23  ;;  %v1245_v30 = vadd.f32 1.0, %v3295_v25 }
 0x205   :  { %3300 = vrcp.f32 %v1245_v30 }
 0x20c   :  { %v3297_v0 = vpop.eup %3296 }
 0x20d   :  { %v1250_v28 = vmul.f32 %v3297_v0, %v3293_v24  ;;  %v3299_v29 = vpop.eup %3298  ;;  %v4012_v24 = vsub.s32 %v1791_v20, %v3978_v58 }
 0x20e   :  { %v1249_v31 = vmul.f32 %v3299_v29, %v185_v26 }
 0x20f   :  { %v3301_v47 = vpop.eup %3300 }
 0x210   :  { %v2915_v32 = vpop.f32.mrb[4].mxu0  ;;  %v1224_v34 = vpop.f32.mrb[4].mxu1  ;;  %v1251_v35 = vadd.f32 %v1250_v28, %v1249_v31 }
 0x211   :  { %v2916_v36 = vpop.f32.mrb[5].mxu0  ;;  %v2957_v37 = vpop.f32.mrb[5].mxu1 }
 0x212   :  { %v2917_v38 = vadd.f32 %v2916_v36, %v2915_v32  ;;  %v2918_v39 = vpop.f32.mrb[6].mxu0  ;;  %v1227_v40 = vpop.f32.mrb[6].mxu1  ;;  %3302 = vtanh.f32 %v1251_v35  ;;  %1262 = vst [vmem:[#allocation22] sm:$0xff] %v1251_v35  ;;  %v1772_v36 = vld [vmem:[#allocation5 + $0x8] sm:$0xff] }
 0x213   :  { %v2919_v41 = vpop.f32.mrb[7].mxu0  ;;  %v2958_v42 = vpop.f32.mrb[7].mxu1  ;;  %v1773_v39 = vld [vmem:[#allocation5 + $0x10] sm:$0xff]  ;;  %v1774_v40 = vld [vmem:[#allocation5 + $0x18] sm:$0xff] }
 0x214   :  { %v1185_v44 = vadd.f32 %v2917_v38, %v356_v33 }
 0x216   :  { %v1225_v45 = vadd.f32 %v1224_v34, %v1185_v44  ;;  %v1771_v34 = vld [vmem:[#allocation5] sm:$0xff] }
 0x218   :  { %v2824_v46 = vmul.f32 -1.442695, %v1225_v45 }
 0x21a   :  { %3304 = vpow2.f32 %v2824_v46 }
 0x21c   :  { %v3303_v48 = vpop.eup %3302 }
 0x21d   :  { %v1253_v50 = vmul.f32 %v3303_v48, %v3301_v47 }
 0x21f   :  { %v1264_v51 = vpack.c.bf16 %v1253_v50, %v1253_v50  ;;  %1261 = vst [vmem:[#allocation20] sm:$0xff] %v1253_v50  ;;  %v1776_v50 = vld [vmem:[#allocation5 + $0x28] sm:$0xff] }
 0x221   :  { %1501 = vmatprep.mubr.bf16.mxu0 %v1264_v51 }
 0x224   :  { %v3305_v52 = vpop.eup %3304 }
 0x225   :  { %v1257_v53 = vadd.f32 1.0, %v3305_v52 }
 0x227   :  { %3306 = vrcp.f32 %v1257_v53 }
 0x231   :  { %v3307_v54 = vpop.eup %3306 }
 0x232   :  { %v1260_v49 = vmul.f32 %v3307_v54, %v3303_v48  ;;  %v1775_v48 = vld [vmem:[#allocation5 + $0x20] sm:$0xff] }
 0x234   :  { %v1263_v55 = vpack.c.bf16 %v1260_v49, %v1260_v49 }
 0x236   :  { %1502 = vmatmul.mubr.bf16.vlgmr.msra.gmra.mrb[8].mxu0 %v1263_v55  ;;  %v1779_v55 = vld [vmem:[#allocation5 + $0x40] sm:$0xff] }
 0x237   :  { %2975 = vmatprep.mubr.msk.bf16.mxu0 %vm3702_vm0, %v3701_v43 }
 0x309   :  { %v1503_v6 = vpop.f32.mrb[8].mxu0 }
 0x30a   :  { %v1505_v8 = vpop.f32.mrb[9].mxu0  ;;  %v1504_v12 = vadd.f32 %v1503_v6, %v1302_v7  ;;  %v4028_v6 = vld [vmem:[#allocation14] ss:$0 sm:$0xff]  ;;  %v1781_v7 = vld [vmem:[#allocation5 + $0x50] sm:$0xff] }
 0x30b   :  { %v1506_v9 = vadd.f32 %v1505_v8, %v1306_v5  ;;  %v1507_v10 = vpop.f32.mrb[10].mxu0 }
 0x30c   :  { %v1508_v11 = vpop.f32.mrb[11].mxu0  ;;  %v4001_v13 = vmax.f32 %v1504_v12, 0.0 }
 0x30d   :  { %3308 = vtanh.f32 %v1506_v9 }
 0x30e   :  { %v1512_v16 = vpack.c.bf16 %v4001_v13, %v4001_v13 }
 0x317   :  { %v4003_v14 = vpop.eup %3308 }
 0x318   :  { %v1513_v15 = vpack.c.bf16 %v4003_v14, %v4003_v14 }
 0x31a   :  { %1750 = vmatprep.mubr.bf16.mxu1 %v1513_v15 }
 0x31b   :  { %1751 = vmatmul.mubr.bf16.vlgmr.msra.gmra.mrb[8].mxu1 %v1512_v16  ;;  %v1782_v16 = vld [vmem:[#allocation5 + $0x58] sm:$0xff] }
 0x3ee   :  { %v1752_v23 = vpop.f32.mrb[8].mxu1 }
 0x3ef   :  { %v1753_v25 = vadd.f32 %v1752_v23, %v1551_v21  ;;  %v1754_v0 = vpop.f32.mrb[9].mxu1  ;;  %v1783_v23 = vld [vmem:[#allocation5 + $0x60] sm:$0xff] }
 0x3f0   :  { %v1755_v26 = vadd.f32 %v1754_v0, %v1555_v22  ;;  %v1756_v27 = vpop.f32.mrb[10].mxu1 }
 0x3f1   :  { %v1757_v28 = vpop.f32.mrb[11].mxu1 }
 0x3f2   :  { %v4014_v29 = vadd.f32 %v1755_v26, %v1753_v25  ;;  %v1788_v30 = vcombine.high %v1755_v26, %v1755_v26  ;;  %v1795_v31 = vrot.slane %v1755_v26, %v4012_v24  ;;  %v1784_v26 = vld [vmem:[#allocation5 + $0x68] sm:$0xff] }
 0x3f4   :  { %v1803_v32 = vcombine.high %v1795_v31, %v1795_v31  ;;  %v1811_v33 = vrot.slane %v1795_v31, %v4012_v24  ;;  %v1802_v61 = vrot.slane %v1788_v30, %v4012_v24 }
 0x3f6   :  { %v1825_v35 = vrot.slane %v1803_v32, %v4012_v24  ;;  %v1833_v58 = vcombine.high %v1811_v33, %v1811_v33  ;;  %v1840_v37 = vrot.slane %v1811_v33, %v3981_v59  ;;  %v1818_v42 = vrot.slane %v1802_v61, %v4012_v24  ;;  %v1785_v33 = vld [vmem:[#allocation5 + $0x70] sm:$0xff] }
 0x3f7   :  { %v1804_v51 = vcombine.high %v1802_v61, %v1802_v61 }
 0x3f8   :  { %v1844_v38 = vrot.slane %v1825_v35, %v3981_v59  ;;  %v1877_v41 = vadd.f32 %v1840_v37, %v1771_v34  ;;  %v1848_v44 = vrot.slane %v1833_v58, %v3981_v59  ;;  %v1878_v45 = vadd.f32 %v1840_v37, %v1772_v36 }
 0x3f9   :  { %v1835_v52 = vcombine.high %v1825_v35, %v1825_v35  ;;  %v1856_v53 = vrot.slane %v1818_v42, %v3981_v59  ;;  %v1832_v57 = vrot.slane %v1804_v51, %v4012_v24  ;;  %v1834_v4 = vcombine.high %v1818_v42, %v1818_v42  ;;  %v1786_v35 = vld [vmem:[#allocation5 + $0x78] sm:$0xff] }
 0x3fa   :  { %v1879_v46 = vadd.f32 %v1844_v38, %v1773_v39  ;;  %v1880_v47 = vadd.f32 %v1844_v38, %v1774_v40  ;;  %3310 = vtanh.f32 %v1877_v41  ;;  %v1881_v54 = vadd.f32 %v1848_v44, %v1775_v48 }
 0x3fb   :  { %v1882_v49 = vadd.f32 %v1848_v44, %v1776_v50  ;;  %v1852_v60 = vrot.slane %v1835_v52, %v3981_v59  ;;  %v1885_v62 = vadd.f32 %v1856_v53, %v1779_v55  ;;  %v1886_v63 = vadd.f32 %v1856_v53, %v1780_v56 }
 0x3fc   :  { %3312 = vtanh.f32 %v1879_v46  ;;  %v1860_v5 = vrot.slane %v1832_v57, %v3981_v59  ;;  %v1836_v18 = vcombine.high %v1832_v57, %v1832_v57  ;;  %v1864_v19 = vrot.slane %v1834_v4, %v3981_v59 }
 0x3fd   :  { %3314 = vtanh.f32 %v1878_v45  ;;  %v1883_v8 = vadd.f32 %v1852_v60, %v1777_v1  ;;  %v1884_v11 = vadd.f32 %v1852_v60, %v1778_v2 }
 0x3fe   :  { %3316 = vtanh.f32 %v1880_v47  ;;  %v1887_v20 = vadd.f32 %v1860_v5, %v1781_v7  ;;  %v1888_v22 = vadd.f32 %v1860_v5, %v1782_v16  ;;  %v1889_v28 = vadd.f32 %v1864_v19, %v1783_v23 }
 0x3ff   :  { %3318 = vtanh.f32 %v1881_v54  ;;  %v1868_v30 = vrot.slane %v1836_v18, %v3981_v59  ;;  %v1890_v32 = vadd.f32 %v1864_v19, %v1784_v26 }
 0x400   :  { %3320 = vtanh.f32 %v1882_v49 }
 0x401   :  { %3322 = vtanh.f32 %v1885_v62  ;;  %v1891_v36 = vadd.f32 %v1868_v30, %v1785_v33  ;;  %v1892_v38 = vadd.f32 %v1868_v30, %v1786_v35 }
 0x402   :  { %3324 = vtanh.f32 %v1886_v63 }
 0x403   :  { %3326 = vtanh.f32 %v1883_v8 }
 0x404   :  { %v3311_v3 = vpop.eup %3310  ;;  %3328 = vtanh.f32 %v1884_v11 }
 0x405   :  { %v1909_v10 = vmul.f32 %v3311_v3, %v4028_v6  ;;  %3330 = vtanh.f32 %v1887_v20 }
 0x406   :  { %v3313_v9 = vpop.eup %3312  ;;  %3332 = vtanh.f32 %v1888_v22 }
 0x407   :  { %v3315_v12 = vpop.eup %3314  ;;  %v1911_v15 = vmul.f32 %v3313_v9, %v4028_v6  ;;  %1925 = vadd.xlane.f32.xlu0 %v1909_v10  ;;  %3334 = vtanh.f32 %v1889_v28 }
 0x408   :  { %v3317_v17 = vpop.eup %3316  ;;  %v1910_v21 = vmul.f32 %v3315_v12, %v4028_v6  ;;  %3336 = vtanh.f32 %v1890_v32 }
 0x409   :  { %1929 = vadd.xlane.f32.xlu1 %v1911_v15  ;;  %v3319_v25 = vpop.eup %3318  ;;  %v1912_v0 = vmul.f32 %v3317_v17, %v4028_v6  ;;  %3338 = vtanh.f32 %v1891_v36 }
 0x40a   :  { %v3321_v27 = vpop.eup %3320  ;;  %v1913_v31 = vmul.f32 %v3319_v25, %v4028_v6  ;;  %3340 = vtanh.f32 %v1892_v38 }
 0x40b   :  { %1927 = vadd.xlane.f32.xlu0 %v1910_v21  ;;  %v3323_v34 = vpop.eup %3322  ;;  %v1914_v61 = vmul.f32 %v3321_v27, %v4028_v6  ;;  %3342 = vtanh.f32 %v4014_v29 }
 0x40c   :  { %v3325_v58 = vpop.eup %3324  ;;  %v1917_v37 = vmul.f32 %v3323_v34, %v4028_v6 }
 0x40d   :  { %1931 = vadd.xlane.f32.xlu1 %v1912_v0  ;;  %v3327_v39 = vpop.eup %3326  ;;  %v1918_v40 = vmul.f32 %v3325_v58, %v4028_v6 }
 0x40e   :  { %v3329_v41 = vpop.eup %3328  ;;  %v1915_v42 = vmul.f32 %v3327_v39, %v4028_v6 }
 0x40f   :  { %1933 = vadd.xlane.f32.xlu0 %v1913_v31  ;;  %v3331_v44 = vpop.eup %3330  ;;  %v1916_v45 = vmul.f32 %v3329_v41, %v4028_v6 }
 0x410   :  { %v3333_v46 = vpop.eup %3332  ;;  %v1919_v47 = vmul.f32 %v3331_v44, %v4028_v6 }
 0x411   :  { %1935 = vadd.xlane.f32.xlu1 %v1914_v61  ;;  %v3335_v48 = vpop.eup %3334  ;;  %v1920_v50 = vmul.f32 %v3333_v46, %v4028_v6 }
 0x412   :  { %v3337_v51 = vpop.eup %3336  ;;  %v1921_v52 = vmul.f32 %v3335_v48, %v4028_v6 }
 0x413   :  { %1941 = vadd.xlane.f32.xlu0 %v1917_v37  ;;  %v3339_v53 = vpop.eup %3338  ;;  %v1922_v54 = vmul.f32 %v3337_v51, %v4028_v6 }
 0x414   :  { %v3341_v49 = vpop.eup %3340  ;;  %v1923_v55 = vmul.f32 %v3339_v53, %v4028_v6 }
 0x415   :  { %1943 = vadd.xlane.f32.xlu1 %v1918_v40  ;;  %v3343_v29 = vpop.eup %3342  ;;  %v1924_v56 = vmul.f32 %v3341_v49, %v4028_v6 }
 0x416   :  { %v1768_v57 = vmul.f32 %v3343_v29, %v4028_v6 }
 0x417   :  { %1937 = vadd.xlane.f32.xlu0 %v1915_v42 }
 0x419   :  { %1939 = vadd.xlane.f32.xlu1 %v1916_v45 }
 0x41b   :  { %1945 = vadd.xlane.f32.xlu0 %v1919_v47 }
 0x41d   :  { %1947 = vadd.xlane.f32.xlu1 %v1920_v50 }
 0x41f   :  { %1949 = vadd.xlane.f32.xlu0 %v1921_v52 }
 0x421   :  { %1951 = vadd.xlane.f32.xlu1 %v1922_v54 }
 0x423   :  { %1953 = vadd.xlane.f32.xlu0 %v1923_v55 }
 0x425   :  { %1955 = vadd.xlane.f32.xlu1 %v1924_v56 }
 0x427   :  { %1769 = vadd.xlane.f32.xlu0 %v1768_v57 }
 0x494   :  { %v4050_v60 = vpop.xlane.xlu0 %1925 }
 0x496   :  { %v4052_v62 = vpop.xlane.xlu1 %1929 }
 0x498   :  { %v4054_v63 = vpop.xlane.xlu0 %1927 }
 0x499   :  { %v1957_v20 = vmax.f32 %v4050_v60, %v4054_v63 }
 0x49a   :  { %v4056_v1 = vpop.xlane.xlu1 %1931 }
 0x49b   :  { %v1964_v2 = vmax.f32 %v4052_v62, %v4056_v1  ;;  %v1958_v30 = vrot.slane %v1957_v20, 4 }
 0x49c   :  { %v4060_v3 = vpop.xlane.xlu0 %1933 }
 0x49d   :  { %v1965_v6 = vrot.slane %v1964_v2, 4  ;;  %v1959_v39 = vmax.f32 %v1957_v20, %v1958_v30 }
 0x49e   :  { %v4062_v4 = vpop.xlane.xlu1 %1935 }
 0x49f   :  { %v1971_v5 = vmax.f32 %v4060_v3, %v4062_v4  ;;  %v1966_v7 = vmax.f32 %v1964_v2, %v1965_v6  ;;  %v1960_v53 = vrot.slane %v1959_v39, 2 }
 0x4a0   :  { %v4066_v9 = vpop.xlane.xlu0 %1941 }
 0x4a1   :  { %v1972_v8 = vrot.slane %v1971_v5, 4  ;;  %v1967_v21 = vrot.slane %v1966_v7, 2 }
 0x4a2   :  { %v4068_v10 = vpop.xlane.xlu1 %1943 }
 0x4a3   :  { %v1985_v11 = vmax.f32 %v4066_v9, %v4068_v10  ;;  %v1973_v12 = vmax.f32 %v1971_v5, %v1972_v8  ;;  %v1968_v31 = vmax.f32 %v1966_v7, %v1967_v21 }
 0x4a4   :  { %v4072_v16 = vpop.xlane.xlu0 %1937 }
 0x4a5   :  { %v1986_v15 = vrot.slane %v1985_v11, 4  ;;  %v1974_v22 = vrot.slane %v1973_v12, 2  ;;  %v1969_v40 = vrot.slane %v1968_v31, 1 }
 0x4a6   :  { %v4074_v17 = vpop.xlane.xlu1 %1939 }
 0x4a7   :  { %v1987_v18 = vmax.f32 %v1985_v11, %v1986_v15  ;;  %v1978_v19 = vmax.f32 %v4072_v16, %v4074_v17  ;;  %v1975_v32 = vmax.f32 %v1973_v12, %v1974_v22  ;;  %v1970_v54 = vmax.f32 %v1968_v31, %v1969_v40 }
 0x4a8   :  { %v4080_v0 = vpop.xlane.xlu0 %1945 }
 0x4a9   :  { %v1988_v23 = vrot.slane %v1987_v18, 2  ;;  %v1979_v25 = vrot.slane %v1978_v19, 4  ;;  %v1976_v41 = vrot.slane %v1975_v32, 1 }
 0x4aa   :  { %v4082_v26 = vpop.xlane.xlu1 %1947 }
 0x4ab   :  { %v1980_v27 = vmax.f32 %v1978_v19, %v1979_v25  ;;  %v1992_v28 = vmax.f32 %v4080_v0, %v4082_v26  ;;  %v1989_v33 = vmax.f32 %v1987_v18, %v1988_v23  ;;  %v1977_v49 = vmax.f32 %v1975_v32, %v1976_v41 }
 0x4ac   :  { %v4086_v35 = vpop.xlane.xlu0 %1949  ;;  %v1961_v19 = vmax.f32 %v1959_v39, %v1960_v53 }
 0x4ad   :  { %v1981_v34 = vrot.slane %v1980_v27, 2  ;;  %v1993_v61 = vrot.slane %v1992_v28, 4  ;;  %v1990_v42 = vrot.slane %v1989_v33, 1 }
 0x4ae   :  { %v4088_v58 = vpop.xlane.xlu1 %1951 }
 0x4af   :  { %v1982_v36 = vmax.f32 %v1980_v27, %v1981_v34  ;;  %v1994_v37 = vmax.f32 %v1992_v28, %v1993_v61  ;;  %v1999_v38 = vmax.f32 %v4086_v35, %v4088_v58  ;;  %v1991_v55 = vmax.f32 %v1989_v33, %v1990_v42 }
 0x4b0   :  { %v4092_v46 = vpop.xlane.xlu0 %1953  ;;  %v1962_v61 = vrot.slane %v1961_v19, 1 }
 0x4b1   :  { %v1995_v44 = vrot.slane %v1994_v37, 2  ;;  %v2000_v45 = vrot.slane %v1999_v38, 4  ;;  %v1983_v48 = vrot.slane %v1982_v36, 1 }
 0x4b2   :  { %v4094_v47 = vpop.xlane.xlu1 %1955  ;;  %v1963_v53 = vmax.f32 %v1961_v19, %v1962_v61 }
 0x4b3   :  { %v1996_v50 = vmax.f32 %v1994_v37, %v1995_v44  ;;  %v2001_v51 = vmax.f32 %v1999_v38, %v2000_v45  ;;  %v2006_v52 = vmax.f32 %v4092_v46, %v4094_v47  ;;  %v1984_v7 = vmax.f32 %v1982_v36, %v1983_v48 }
 0x4b4   :  { %v4098_v2 = vpop.xlane.xlu0 %1769 }
 0x4b5   :  { %v1997_v29 = vrot.slane %v1996_v50, 1  ;;  %v2002_v56 = vrot.slane %v2001_v51, 2  ;;  %v2007_v57 = vrot.slane %v2006_v52, 4  ;;  %v2014_v5 = vrot.slane %v4098_v2, 1 }
 0x4b6   :  { %v2015_v6 = vrot.slane %v4098_v2, 2  ;;  %v2016_v8 = vrot.slane %v4098_v2, 3  ;;  %v2017_v11 = vrot.slane %v4098_v2, 4  ;;  %v2018_v20 = vrot.slane %v4098_v2, 5 }
 0x4b7   :  { %v1998_v12 = vmax.f32 %v1996_v50, %v1997_v29  ;;  %v2003_v15 = vmax.f32 %v2001_v51, %v2002_v56  ;;  %v2008_v18 = vmax.f32 %v2006_v52, %v2007_v57  ;;  %v4105_v21 = vmax.f32 %v1970_v54, %v2014_v5 }
 0x4b8   :  { %v4107_v22 = vmax.f32 %v1977_v49, %v2015_v6  ;;  %v4109_v27 = vmax.f32 %v1984_v7, %v2016_v8  ;;  %v4111_v28 = vmax.f32 %v1991_v55, %v2017_v11  ;;  %v2019_v33 = vrot.slane %v4098_v2, 6 }
 0x4b9   :  { %v2004_v23 = vrot.slane %v2003_v15, 1  ;;  %v2009_v25 = vrot.slane %v2008_v18, 2  ;;  %v2077_v30 = vrot.slane %v4105_v21, %v3981_v59  ;;  %v4116_v34 = vmax.f32 %v1998_v12, %v2018_v20 }
 0x4ba   :  { %v2081_v36 = vrot.slane %v4107_v22, %v3981_v59  ;;  %v2085_v37 = vrot.slane %v4109_v27, %v3981_v59  ;;  %v2089_v40 = vrot.slane %v4111_v28, %v3981_v59  ;;  %v2020_v50 = vrot.slane %v4098_v2, 7 }
 0x4bb   :  { %v2005_v31 = vmax.f32 %v2003_v15, %v2004_v23  ;;  %v2010_v32 = vmax.f32 %v2008_v18, %v2009_v25  ;;  %v2104_v41 = vsub.f32 %v4052_v62, %v2077_v30  ;;  %v2105_v42 = vsub.f32 %v4056_v1, %v2077_v30 }
 0x4bc   :  { %v2106_v44 = vsub.f32 %v4060_v3, %v2081_v36  ;;  %v2107_v45 = vsub.f32 %v4062_v4, %v2081_v36  ;;  %v2093_v51 = vrot.slane %v4116_v34, %v3981_v59  ;;  %v2108_v52 = vsub.f32 %v4072_v16, %v2085_v37 }
 0x4bd   :  { %v2011_v38 = vrot.slane %v2010_v32, 1  ;;  %v4122_v39 = vmax.f32 %v2005_v31, %v2019_v33  ;;  %v2109_v54 = vsub.f32 %v4074_v17, %v2085_v37  ;;  %v2110_v1 = vsub.f32 %v4066_v9, %v2089_v40 }
 0x4be   :  { %v2122_v3 = vmul.f32 1.442695, %v2104_v41  ;;  %v2111_v4 = vsub.f32 %v4068_v10, %v2089_v40  ;;  %v2124_v55 = vmul.f32 1.442695, %v2105_v42  ;;  %v2126_v29 = vmul.f32 1.442695, %v2106_v44 }
 0x4bf   :  { %v2012_v48 = vmax.f32 %v2010_v32, %v2011_v38  ;;  %v2097_v62 = vrot.slane %v4122_v39, %v3981_v59  ;;  %v2128_v56 = vmul.f32 1.442695, %v2107_v45  ;;  %v2112_v16 = vsub.f32 %v4080_v0, %v2093_v51 }
 0x4c0   :  { %3344 = vpow2.f32 %v2122_v3  ;;  %v2130_v17 = vmul.f32 1.442695, %v2108_v52  ;;  %v2113_v5 = vsub.f32 %v4082_v26, %v2093_v51  ;;  %v2132_v6 = vmul.f32 1.442695, %v2109_v54 }
 0x4c1   :  { %v4135_v49 = vmax.f32 %v2012_v48, %v2020_v50  ;;  %3346 = vpow2.f32 %v2124_v55  ;;  %v2029_v8 = vmax.f32 %v1963_v53, %v4098_v2  ;;  %v2114_v9 = vsub.f32 %v4086_v35, %v2097_v62 }
 0x4c2   :  { %3348 = vpow2.f32 %v2126_v29  ;;  %v2134_v10 = vmul.f32 1.442695, %v2110_v1  ;;  %v2115_v11 = vsub.f32 %v4088_v58, %v2097_v62  ;;  %v2136_v7 = vmul.f32 1.442695, %v2111_v4 }
 0x4c3   :  { %v2101_v57 = vrot.slane %v4135_v49, %v3981_v59  ;;  %3350 = vpow2.f32 %v2128_v56  ;;  %v2045_v12 = vrot.slane %v4105_v21, 7  ;;  %v2138_v15 = vmul.f32 1.442695, %v2112_v16 }
 0x4c4   :  { %3352 = vpow2.f32 %v2130_v17  ;;  %v2140_v18 = vmul.f32 1.442695, %v2113_v5  ;;  %v2073_v19 = vrot.slane %v2029_v8, %v3981_v59  ;;  %v2142_v35 = vmul.f32 1.442695, %v2114_v9 }
 0x4c5   :  { %v2116_v0 = vsub.f32 %v4092_v46, %v2101_v57  ;;  %v2117_v26 = vsub.f32 %v4094_v47, %v2101_v57  ;;  %3354 = vpow2.f32 %v2132_v6  ;;  %v2048_v58 = vrot.slane %v4107_v22, 6 }
 0x4c6   :  { %3356 = vpow2.f32 %v2134_v10  ;;  %v2144_v20 = vmul.f32 1.442695, %v2115_v11  ;;  %v2102_v23 = vsub.f32 %v4050_v60, %v2073_v19  ;;  %v2047_v46 = vsel %vm2046_vm1, %v2045_v12, %v2029_v8 }
 0x4c7   :  { %3358 = vpow2.f32 %v2136_v7  ;;  %v2146_v21 = vmul.f32 1.442695, %v2116_v0  ;;  %v2103_v25 = vsub.f32 %v4054_v63, %v2073_v19  ;;  %v2148_v47 = vmul.f32 1.442695, %v2117_v26 }
 0x4c8   :  { %3360 = vpow2.f32 %v2138_v15  ;;  %v2118_v31 = vmul.f32 1.442695, %v2102_v23  ;;  %v2050_v22 = vsel %vm2049_vm2, %v2048_v58, %v2047_v46  ;;  %v2051_v63 = vrot.slane %v4109_v27, 5 }
 0x4c9   :  { %3362 = vpow2.f32 %v2140_v18  ;;  %v2120_v61 = vmul.f32 1.442695, %v2103_v25  ;;  %v2054_v45 = vrot.slane %v4111_v28, 4  ;;  %v2057_v56 = vrot.slane %v4116_v34, 3 }
 0x4ca   :  { %v4156_v30 = vpop.eup %3344  ;;  %3364 = vpow2.f32 %v2142_v35  ;;  %v2053_v42 = vsel %vm2052_vm4, %v2051_v63, %v2050_v22  ;;  %v2060_v5 = vrot.slane %v4122_v39, 2  ;;  %v2063_v9 = vrot.slane %v4135_v49, 1 }
 0x4cb   :  { %v4158_v32 = vpop.eup %3346  ;;  %3366 = vpow2.f32 %v2144_v20  ;;  %v2160_v60 = vsel %vm2150_vm3, %v4156_v30, 0.0  ;;  %v2056_v62 = vsel %vm2055_vm5, %v2054_v45, %v2053_v42 }
 0x4cc   :  { %v4163_v33 = vpop.eup %3348  ;;  %3368 = vpow2.f32 %v2146_v21  ;;  %v2161_v36 = vsel %vm2150_vm3, %v4158_v32, 0.0  ;;  %v2059_v11 = vsel %vm2058_vm6, %v2057_v56, %v2056_v62 }
 0x4cd   :  { %v4168_v37 = vpop.eup %3350  ;;  %3370 = vpow2.f32 %v2148_v47  ;;  %v2169_v38 = vsel %vm2150_vm3, %v4163_v33, 0.0  ;;  %v2162_v27 = vadd.f32 %v2161_v36, %v2160_v60  ;;  %v2062_v46 = vsel %vm2061_vm7, %v2060_v5, %v2059_v11 }
 0x4ce   :  { %v4172_v40 = vpop.eup %3352  ;;  %v2170_v41 = vsel %vm2150_vm3, %v4168_v37, 0.0  ;;  %3372 = vpow2.f32 %v2118_v31  ;;  %v2065_v31 = vsel %vm2064_vm8, %v2063_v9, %v2062_v46 }
 0x4cf   :  { %v4177_v44 = vpop.eup %3354  ;;  %v2178_v48 = vsel %vm2150_vm3, %v4172_v40, 0.0  ;;  %v2171_v50 = vadd.f32 %v2170_v41, %v2169_v38  ;;  %3374 = vpow2.f32 %v2120_v61  ;;  %v2163_v4 = vrot.slane %v2162_v27, 4 }
 0x4d0   :  { %v4182_v51 = vpop.eup %3356  ;;  %v2179_v52 = vsel %vm2150_vm3, %v4177_v44, 0.0 }
 0x4d1   :  { %v4186_v53 = vpop.eup %3358  ;;  %v2187_v54 = vsel %vm2150_vm3, %v4182_v51, 0.0  ;;  %v2180_v28 = vadd.f32 %v2179_v52, %v2178_v48  ;;  %v2172_v55 = vrot.slane %v2171_v50, 4  ;;  %v2164_v39 = vadd.f32 %v2163_v4, %v2162_v27 }
 0x4d2   :  { %v4191_v1 = vpop.eup %3360  ;;  %v2188_v3 = vsel %vm2150_vm3, %v4186_v53, 0.0  ;;  %v2067_v48 = vsub.f32 %v4098_v2, %v2065_v31 }
 0x4d3   :  { %v4195_v29 = vpop.eup %3362  ;;  %v2189_v57 = vadd.f32 %v2188_v3, %v2187_v54  ;;  %v2196_v16 = vsel %vm2150_vm3, %v4191_v1, 0.0  ;;  %v2173_v0 = vadd.f32 %v2172_v55, %v2171_v50  ;;  %v2181_v15 = vrot.slane %v2180_v28, 4 }
 0x4d4   :  { %v4200_v17 = vpop.eup %3364  ;;  %v2197_v6 = vsel %vm2150_vm3, %v4195_v29, 0.0  ;;  %v2165_v22 = vrot.slane %v2164_v39, 2 }
 0x4d5   :  { %v4205_v8 = vpop.eup %3366  ;;  %v2198_v10 = vadd.f32 %v2197_v6, %v2196_v16  ;;  %v2205_v34 = vsel %vm2150_vm3, %v4200_v17, 0.0  ;;  %v2190_v18 = vrot.slane %v2189_v57, 4  ;;  %v2174_v60 = vrot.slane %v2173_v0, 2 }
 0x4d6   :  { %v4211_v7 = vpop.eup %3368  ;;  %v2206_v12 = vsel %vm2150_vm3, %v4205_v8, 0.0  ;;  %v2182_v63 = vadd.f32 %v2181_v15, %v2180_v28  ;;  %v2166_v52 = vadd.f32 %v2165_v22, %v2164_v39  ;;  %v2068_v16 = vmul.f32 1.442695, %v2067_v48 }
 0x4d7   :  { %v4215_v26 = vpop.eup %3370  ;;  %v2207_v19 = vadd.f32 %v2206_v12, %v2205_v34  ;;  %v2214_v49 = vsel %vm2150_vm3, %v4211_v7, 0.0  ;;  %v2199_v58 = vrot.slane %v2198_v10, 4  ;;  %v2191_v41 = vadd.f32 %v2190_v18, %v2189_v57 }
 0x4d8   :  { %v4219_v35 = vpop.eup %3372  ;;  %v2215_v20 = vsel %vm2150_vm3, %v4215_v26, 0.0  ;;  %v2183_v54 = vrot.slane %v2182_v63, 2  ;;  %v2175_v62 = vadd.f32 %v2174_v60, %v2173_v0  ;;  %v2167_v6 = vrot.slane %v2166_v52, 1 }
 0x4d9   :  { %v2208_v23 = vrot.slane %v2207_v19, 4  ;;  %v2216_v21 = vadd.f32 %v2215_v20, %v2214_v49  ;;  %v2151_v25 = vsel %vm2150_vm3, %v4219_v35, 0.0  ;;  %v4226_v47 = vpop.eup %3374  ;;  %v2200_v42 = vadd.f32 %v2199_v58, %v2198_v10 }
 0x4da   :  { %v2152_v38 = vsel %vm2150_vm3, %v4226_v47, 0.0  ;;  %v2192_v3 = vrot.slane %v2191_v41, 2  ;;  %v2184_v9 = vadd.f32 %v2183_v54, %v2182_v63  ;;  %v2176_v34 = vrot.slane %v2175_v62, 1 }
 0x4db   :  { %v2209_v61 = vadd.f32 %v2208_v23, %v2207_v19  ;;  %v2217_v36 = vrot.slane %v2216_v21, 4  ;;  %v2153_v27 = vadd.f32 %v2152_v38, %v2151_v25  ;;  %v2201_v56 = vrot.slane %v2200_v42, 2 }
 0x4dc   :  { %v2193_v57 = vadd.f32 %v2192_v3, %v2191_v41  ;;  %3376 = vpow2.f32 %v2068_v16  ;;  %v2168_v39 = vadd.f32 %v2167_v6, %v2166_v52  ;;  %v2185_v18 = vrot.slane %v2184_v9, 1 }
 0x4dd   :  { %v2218_v45 = vadd.f32 %v2217_v36, %v2216_v21  ;;  %v2154_v50 = vrot.slane %v2153_v27, 4  ;;  %v2210_v4 = vrot.slane %v2209_v61, 2  ;;  %v2202_v12 = vadd.f32 %v2201_v56, %v2200_v42 }
 0x4de   :  { %v2177_v0 = vadd.f32 %v2176_v34, %v2175_v62  ;;  %v2194_v19 = vrot.slane %v2193_v57, 1  ;;  %v2186_v21 = vadd.f32 %v2185_v18, %v2184_v9 }
 0x4df   :  { %v2155_v55 = vadd.f32 %v2154_v50, %v2153_v27  ;;  %v2219_v28 = vrot.slane %v2218_v45, 2  ;;  %v2211_v10 = vadd.f32 %v2210_v4, %v2209_v61  ;;  %v2203_v20 = vrot.slane %v2202_v12, 1 }
 0x4e0   :  { %v2195_v25 = vadd.f32 %v2194_v19, %v2193_v57 }
 0x4e1   :  { %v2156_v5 = vrot.slane %v2155_v55, 2  ;;  %v2220_v15 = vadd.f32 %v2219_v28, %v2218_v45  ;;  %v2212_v49 = vrot.slane %v2211_v10, 1  ;;  %v2204_v60 = vadd.f32 %v2203_v20, %v2202_v12 }
 0x4e3   :  { %v2157_v11 = vadd.f32 %v2156_v5, %v2155_v55  ;;  %v2221_v23 = vrot.slane %v2220_v15, 1  ;;  %v2213_v31 = vadd.f32 %v2212_v49, %v2211_v10 }
 0x4e5   :  { %v2158_v2 = vrot.slane %v2157_v11, 1  ;;  %v2222_v63 = vadd.f32 %v2221_v23, %v2220_v15 }
 0x4e6   :  { %v3377_v42 = vpop.eup %3376 }
 0x4e7   :  { %v2159_v58 = vadd.f32 %v2158_v2, %v2157_v11 }
 0x4e9   :  { %v2231_v46 = vsel %vm2046_vm1, %v2168_v39, %v2159_v58 }
 0x4ea   :  { %v2232_v22 = vsel %vm2049_vm2, %v2177_v0, %v2231_v46 }
 0x4eb   :  { %v2233_v61 = vsel %vm2052_vm4, %v2186_v21, %v2232_v22 }
 0x4ec   :  { %v2234_v36 = vsel %vm2055_vm5, %v2195_v25, %v2233_v61 }
 0x4ed   :  { %v2235_v38 = vsel %vm2058_vm6, %v2204_v60, %v2234_v36  ;;  %v2351_v60 = vld [vmem:[#allocation2 + $0x18] sm:$0xff]  ;;  %v2348_v36 = vld [vmem:[#allocation2] sm:$0xff] }
 0x4ee   :  { %v2236_v41 = vsel %vm2061_vm7, %v2213_v31, %v2235_v38  ;;  %v2353_v38 = vld [vmem:[#allocation2 + $0x28] sm:$0xff] }
 0x4ef   :  { %v2237_v27 = vsel %vm2064_vm8, %v2222_v63, %v2236_v41  ;;  %v2349_v63 = vld [vmem:[#allocation2 + $0x8] sm:$0xff]  ;;  %v2350_v41 = vld [vmem:[#allocation2 + $0x10] sm:$0xff] }
 0x4f0   :  { %v2239_v45 = vadd.f32 %v3377_v42, %v2237_v27 }
 0x4f2   :  { %3378 = vrcp.f32 %v2239_v45  ;;  %v2352_v45 = vld [vmem:[#allocation2 + $0x20] sm:$0xff] }
 0x4fc   :  { %v3379_v48 = vpop.eup %3378 }
 0x4fd   :  { %v2250_v50 = vrot.slane %v3379_v48, %v4012_v24  ;;  %v2243_v52 = vcombine.high %v3379_v48, %v3379_v48  ;;  %v2241_v0 = vmul.f32 %v3379_v48, %v3377_v42 }
 0x4ff   :  { %v2266_v54 = vrot.slane %v2250_v50, %v4012_v24  ;;  %v2258_v62 = vcombine.high %v2250_v50, %v2250_v50  ;;  %v2257_v3 = vrot.slane %v2243_v52, %v4012_v24 }
 0x501   :  { %v2295_v4 = vrot.slane %v2266_v54, %v3981_v59  ;;  %v2280_v55 = vrot.slane %v2258_v62, %v4012_v24  ;;  %v2259_v56 = vcombine.high %v2257_v3, %v2257_v3  ;;  %v2273_v28 = vrot.slane %v2257_v3, %v4012_v24 }
 0x502   :  { %v2288_v10 = vcombine.high %v2266_v54, %v2266_v54 }
 0x503   :  { %v2333_v16 = vmul.f32 %v4226_v47, %v2295_v4  ;;  %v2332_v5 = vmul.f32 %v4219_v35, %v2295_v4  ;;  %v2299_v6 = vrot.slane %v2280_v55, %v3981_v59  ;;  %v2287_v9 = vrot.slane %v2259_v56, %v4012_v24  ;;  %v2357_v4 = vld [vmem:[#allocation2 + $0x48] sm:$0xff] }
 0x504   :  { %v2289_v34 = vcombine.high %v2273_v28, %v2273_v28  ;;  %v2303_v24 = vrot.slane %v2288_v10, %v3981_v59  ;;  %v2311_v19 = vrot.slane %v2273_v28, %v3981_v59  ;;  %v2356_v28 = vld [vmem:[#allocation2 + $0x40] sm:$0xff] }
 0x505   :  { %2377 = vperm.xlu0 %3015, %v2333_v16   ;;  %2372 = vperm.xlu1 %3014, %v2332_v5   ;;  %v2315_v57 = vrot.slane %v2287_v9, %v3981_v59  ;;  %v2334_v11 = vmul.f32 %v4156_v30, %v2299_v6  ;;  %v2291_v2 = vcombine.high %v2287_v9, %v2287_v9 }
 0x506   :  { %v2319_v15 = vrot.slane %v2289_v34, %v3981_v59  ;;  %v2335_v35 = vmul.f32 %v4158_v32, %v2299_v6  ;;  %v2336_v18 = vmul.f32 %v4163_v33, %v2303_v24  ;;  %v2340_v32 = vmul.f32 %v4182_v51, %v2311_v19  ;;  %v3280_v51 = vld [vmem:[#allocation16] sm:$0xff]  }
 0x507   :  { %v2342_v12 = vmul.f32 %v4191_v1, %v2315_v57  ;;  %v2323_v39 = vrot.slane %v2291_v2, %v3981_v59  ;;  %v2337_v1 = vmul.f32 %v4168_v37, %v2303_v24  ;;  %v2341_v49 = vmul.f32 %v4186_v53, %v2311_v19  ;;  %2960 = vmatpush3.bf16.msra.mxu0 %v3280_v51  ;;  %v3284_v53 = vld [vmem:[#allocation16 + $0x20] sm:$0xff]  }
 0x508   :  { %v2344_v47 = vmul.f32 %v4200_v17, %v2319_v15  ;;  %v2290_v17 = vcombine.high %v2280_v55, %v2280_v55  ;;  %v2343_v37 = vmul.f32 %v4195_v29, %v2315_v57  ;;  %v2345_v20 = vmul.f32 %v4205_v8, %v2319_v15  ;;  %2961 = vmatprep.subr.bf16.mxu0 %v3701_v43  ;;  %v3285_v29 = vld [vmem:[#allocation16 + $0x28] sm:$0xff]   ;;  %v3286_v8 = vld [vmem:[#allocation16 + $0x30] sm:$0xff]  }
 0x509   :  { %2382 = vperm.xlu1 %3014, %v2334_v11   ;;  %2422 = vperm.xlu0 %3015, %v2342_v12   ;;  %v2346_v30 = vmul.f32 %v4211_v7, %v2323_v39  ;;  %v2347_v23 = vmul.f32 %v4215_v26, %v2323_v39  ;;  %v3287_v26 = vld [vmem:[#allocation16 + $0x38] sm:$0xff]   ;;  %v2354_v11 = vld [vmem:[#allocation2 + $0x30] sm:$0xff]  ;;  %v2355_v12 = vld [vmem:[#allocation2 + $0x38] sm:$0xff] }
 0x50a   :  { %v2307_v58 = vrot.slane %v2290_v17, %v3981_v59  ;;  %v3281_v59 = vld [vmem:[#allocation16 + $0x8] sm:$0xff]  }
 0x50b   :  { %2962 = vmatpush3.bf16.msra.mxu0 %v3281_v59 }
 0x50c   :  { %v2338_v33 = vmul.f32 %v4172_v40, %v2307_v58  ;;  %v2339_v7 = vmul.f32 %v4177_v44, %v2307_v58  ;;  %2963 = vmatprep.subr.bf16.mxu0 %v3701_v43  ;;  %v3282_v40 = vld [vmem:[#allocation16 + $0x10] sm:$0xff]   ;;  %v3283_v44 = vld [vmem:[#allocation16 + $0x18] sm:$0xff]  }
 0x50d   :  { %2387 = vperm.xlu1 %3014, %v2335_v35   ;;  %2432 = vperm.xlu0 %3015, %v2344_v47  }
 0x50f   :  { %2964 = vmatpush3.bf16.msra.mxu0 %v3282_v40 }
 0x510   :  { %2965 = vmatprep.subr.bf16.mxu0 %v3701_v43 }
 0x511   :  { %2392 = vperm.xlu1 %3014, %v2336_v18   ;;  %2442 = vperm.xlu0 %3015, %v2346_v30   ;;  %v2358_v18 = vld [vmem:[#allocation2 + $0x50] sm:$0xff] }
 0x513   :  { %2966 = vmatpush3.bf16.msra.mxu0 %v3283_v44 }
 0x514   :  { %2967 = vmatprep.subr.bf16.mxu0 %v3701_v43 }
 0x515   :  { %2397 = vperm.xlu1 %3014, %v2337_v1   ;;  %2366 = vperm.xlu0 %3015, %v2241_v0   ;;  %v2359_v1 = vld [vmem:[#allocation2 + $0x58] sm:$0xff] }
 0x517   :  { %2968 = vmatpush3.bf16.msra.mxu0 %v3284_v53 }
 0x518   :  { %2969 = vmatprep.subr.bf16.mxu0 %v3701_v43 }
 0x519   :  { %2412 = vperm.xlu1 %3014, %v2340_v32  }
 0x51b   :  { %2970 = vmatpush3.bf16.msra.mxu0 %v3285_v29 }
 0x51c   :  { %2971 = vmatprep.subr.bf16.mxu0 %v3701_v43 }
 0x51d   :  { %2417 = vperm.xlu1 %3014, %v2341_v49  }
 0x51f   :  { %2972 = vmatpush3.bf16.msra.mxu0 %v3286_v8 }
 0x520   :  { %2973 = vmatprep.subr.bf16.mxu0 %v3701_v43 }
 0x521   :  { %2402 = vperm.xlu1 %3014, %v2338_v33   ;;  %v2360_v33 = vld [vmem:[#allocation2 + $0x60] sm:$0xff] }
 0x523   :  { %2974 = vmatpush3.bf16.msra.mxu0 %v3287_v26  ;;  %v2362_v26 = vld [vmem:[#allocation2 + $0x70] sm:$0xff] }
 0x525   :  { %2407 = vperm.xlu1 %3014, %v2339_v7  }
 0x529   :  { %2427 = vperm.xlu1 %3014, %v2343_v37  }
 0x52d   :  { %2437 = vperm.xlu1 %3014, %v2345_v20  }
 0x531   :  { %2447 = vperm.xlu1 %3014, %v2347_v23   ;;  %v2361_v23 = vld [vmem:[#allocation2 + $0x68] sm:$0xff] }
 0x584   :  { %v2373_v21 = vpop.permute.xlu1 %2372  ;;  %v2378_v61 = vpop.permute.xlu0 %2377 }
 0x585   :  { %v2451_v48 = vmul.f32 %v2378_v61, %v2349_v63  ;;  %v2450_v50 = vmul.f32 %v2373_v21, %v2348_v36  ;;  %v2363_v63 = vld [vmem:[#allocation2 + $0x78] sm:$0xff] }
 0x587   :  { %v2466_v55 = vadd.f32 %v2451_v48, %v2450_v50 }
 0x588   :  { %v2383_v46 = vpop.permute.xlu1 %2382  ;;  %v2423_v6 = vpop.permute.xlu0 %2422 }
 0x589   :  { %v2452_v54 = vmul.f32 %v2383_v46, %v2350_v41  ;;  %v2467_v34 = vrot.slane %v2466_v55, 4  ;;  %v2460_v49 = vmul.f32 %v2423_v6, %v2358_v18 }
 0x58b   :  { %v2468_v39 = vadd.f32 %v2467_v34, %v2466_v55 }
 0x58c   :  { %v2388_v25 = vpop.permute.xlu1 %2387  ;;  %v2433_v0 = vpop.permute.xlu0 %2432 }
 0x58d   :  { %v2453_v27 = vmul.f32 %v2388_v25, %v2351_v60  ;;  %v2469_v20 = vrot.slane %v2468_v39, 2  ;;  %v2462_v44 = vmul.f32 %v2433_v0, %v2360_v33 }
 0x58f   :  { %v2473_v3 = vadd.f32 %v2453_v27, %v2452_v54 }
 0x590   :  { %v2393_v31 = vpop.permute.xlu1 %2392  ;;  %v2443_v21 = vpop.permute.xlu0 %2442 }
 0x591   :  { %v2454_v43 = vmul.f32 %v2393_v31, %v2352_v45  ;;  %v2474_v9 = vrot.slane %v2473_v3, 4  ;;  %v2464_v41 = vmul.f32 %v2443_v21, %v2362_v26 }
 0x593   :  { %v2475_v35 = vadd.f32 %v2474_v9, %v2473_v3 }
 0x594   :  { %v2398_v22 = vpop.permute.xlu1 %2397  ;;  %v2367_v0 = vpop.permute.xlu0 %2366 }
 0x595   :  { %v2455_v52 = vmul.f32 %v2398_v22, %v2353_v38  ;;  %v2476_v58 = vrot.slane %v2475_v35, 2  ;;  %v2470_v22 = vadd.f32 %v2469_v20, %v2468_v39 }
 0x597   :  { %v2480_v56 = vadd.f32 %v2455_v52, %v2454_v43  ;;  %v2477_v8 = vadd.f32 %v2476_v58, %v2475_v35  ;;  %v2471_v54 = vrot.slane %v2470_v22, 1  ;;  %v2369_v58 = vmul.f32 %v2367_v0, %v4001_v13 }
 0x598   :  { %v2413_v42 = vpop.permute.xlu1 %2412 }
 0x599   :  { %v2481_v57 = vrot.slane %v2480_v56, 4  ;;  %v2458_v10 = vmul.f32 %v2413_v42, %v2356_v28  ;;  %v2478_v45 = vrot.slane %v2477_v8, 1  ;;  %v2472_v6 = vadd.f32 %v2471_v54, %v2470_v22 }
 0x59b   :  { %v2482_v30 = vadd.f32 %v2481_v57, %v2480_v56  ;;  %v2479_v28 = vadd.f32 %v2478_v45, %v2477_v8 }
 0x59c   :  { %v2418_v62 = vpop.permute.xlu1 %2417 }
 0x59d   :  { %v2459_v16 = vmul.f32 %v2418_v62, %v2357_v4  ;;  %v2483_v51 = vrot.slane %v2482_v30, 2 }
 0x59f   :  { %v2494_v15 = vadd.f32 %v2459_v16, %v2458_v10  ;;  %v2484_v60 = vadd.f32 %v2483_v51, %v2482_v30 }
 0x5a0   :  { %v2403_v5 = vpop.permute.xlu1 %2402 }
 0x5a1   :  { %v2456_v47 = vmul.f32 %v2403_v5, %v2354_v11  ;;  %v2495_v32 = vrot.slane %v2494_v15, 4  ;;  %v2485_v43 = vrot.slane %v2484_v60, 1 }
 0x5a3   :  { %v2496_v53 = vadd.f32 %v2495_v32, %v2494_v15  ;;  %v2486_v9 = vadd.f32 %v2485_v43, %v2484_v60  ;;  %v2530_v15 = vsel %vm2046_vm1, %v2479_v28, %v2472_v6 }
 0x5a4   :  { %v2408_v2 = vpop.permute.xlu1 %2407 }
 0x5a5   :  { %v2457_v24 = vmul.f32 %v2408_v2, %v2355_v12  ;;  %v2497_v42 = vrot.slane %v2496_v53, 2 }
 0x5a7   :  { %v2487_v19 = vadd.f32 %v2457_v24, %v2456_v47  ;;  %v2498_v56 = vadd.f32 %v2497_v42, %v2496_v53  ;;  %v2531_v47 = vsel %vm2049_vm2, %v2486_v9, %v2530_v15 }
 0x5a8   :  { %v2428_v17 = vpop.permute.xlu1 %2427 }
 0x5a9   :  { %v2488_v7 = vrot.slane %v2487_v19, 4  ;;  %v2461_v37 = vmul.f32 %v2428_v17, %v2359_v1  ;;  %v2499_v12 = vrot.slane %v2498_v56, 1 }
 0x5ab   :  { %v2489_v59 = vadd.f32 %v2488_v7, %v2487_v19  ;;  %v2501_v40 = vadd.f32 %v2461_v37, %v2460_v49  ;;  %v2500_v30 = vadd.f32 %v2499_v12, %v2498_v56 }
 0x5ac   :  { %v2438_v29 = vpop.permute.xlu1 %2437 }
 0x5ad   :  { %v2490_v46 = vrot.slane %v2489_v59, 2  ;;  %v2502_v25 = vrot.slane %v2501_v40, 4  ;;  %v2463_v31 = vmul.f32 %v2438_v29, %v2361_v23 }
 0x5af   :  { %v2491_v61 = vadd.f32 %v2490_v46, %v2489_v59  ;;  %v2503_v36 = vadd.f32 %v2502_v25, %v2501_v40  ;;  %v2508_v38 = vadd.f32 %v2463_v31, %v2462_v44 }
 0x5b0   :  { %v2448_v27 = vpop.permute.xlu1 %2447 }
 0x5b1   :  { %v2504_v48 = vrot.slane %v2503_v36, 2  ;;  %v2509_v50 = vrot.slane %v2508_v38, 4  ;;  %v2465_v52 = vmul.f32 %v2448_v27, %v2363_v63  ;;  %v2492_v62 = vrot.slane %v2491_v61, 1 }
 0x5b3   :  { %v2505_v3 = vadd.f32 %v2504_v48, %v2503_v36  ;;  %v2510_v4 = vadd.f32 %v2509_v50, %v2508_v38  ;;  %v2515_v55 = vadd.f32 %v2465_v52, %v2464_v41  ;;  %v2493_v34 = vadd.f32 %v2492_v62, %v2491_v61 }
 0x5b5   :  { %v2511_v16 = vrot.slane %v2510_v4, 2  ;;  %v2516_v5 = vrot.slane %v2515_v55, 4  ;;  %v2506_v57 = vrot.slane %v2505_v3, 1  ;;  %v2532_v24 = vsel %vm2052_vm4, %v2493_v34, %v2531_v47 }
 0x5b6   :  { %v2533_v32 = vsel %vm2055_vm5, %v2500_v30, %v2532_v24 }
 0x5b7   :  { %v2512_v10 = vadd.f32 %v2511_v16, %v2510_v4  ;;  %v2517_v11 = vadd.f32 %v2516_v5, %v2515_v55  ;;  %v2507_v39 = vadd.f32 %v2506_v57, %v2505_v3 }
 0x5b9   :  { %v2513_v2 = vrot.slane %v2512_v10, 1  ;;  %v2518_v35 = vrot.slane %v2517_v11, 2  ;;  %v2534_v17 = vsel %vm2058_vm6, %v2507_v39, %v2533_v32 }
 0x5bb   :  { %v2519_v18 = vadd.f32 %v2518_v35, %v2517_v11  ;;  %v2514_v1 = vadd.f32 %v2513_v2, %v2512_v10 }
 0x5bd   :  { %v2520_v19 = vrot.slane %v2519_v18, 1  ;;  %v2535_v33 = vsel %vm2061_vm7, %v2514_v1, %v2534_v17 }
 0x5bf   :  { %v2521_v49 = vadd.f32 %v2520_v19, %v2519_v18 }
 0x5c1   :  { %v2536_v7 = vsel %vm2064_vm8, %v2521_v49, %v2535_v33 }
 0x5c2   :  { %v2538_v37 = vadd.f32 %v2536_v7, %v2369_v58 }
 0x5c4   :  { %v2539_v20 = vadd.f32 %v4003_v14, %v2538_v37 }
 0x5c6   :  { %v2540_v51 = vpack.c.bf16 %v2539_v20, %v2539_v20 }
 0x5c8   :  { %2976 = vmatmul.mubr.bf16.vlgmr.msra.gmra.mrb[12].mxu0 %v2540_v51 }
 0x5c9   :  { %3613 = shalt.err (!%p3610_p0)
}
 0x5ca   :  { %s3614_s29 = scalar_lea.hbm %s4337_s16, 128 }
 0x5cb   :  { %p3615_p1 = scmp.ne.s32.totalorder %s4337_s16, %s3614_s29  ;;  %p3618_p2 = scmp.lt.u32.totalorder %s3614_s29, %s4337_s16 }
 0x5cd   :  { %p3620_p3 = pnand %p3618_p2, %p3615_p1 }
 0x5cf   :  { %3623 = shalt.err (!%p3620_p3)
}
 0x5d0   :  { %2673 = dma.vmem_to_hbm [thread:$0]  %s2671_s23, 128, %s4337_s16, [#allocation21]  }
 0x5d1   :  { %s3705_s22 = smov [#allocation22]  }
 0x5d2   :  { %s2680_s13 = sshll.u32 %s3705_s22, 4  ;;  %s2681_s13 = int_to_ptr.vmem [resolvable:$true] %s2680_s13 }
 0x5d3   :  { %s3624_s18 = scalar_lea.vmem %s2681_s13, 128  ;;  %p3629_p5 = scmp.lt.s32.totalorder %s2681_s13, %s2681_s13 }
 0x5d4   :  { %p3625_p4 = scmp.ne.s32.totalorder %s2681_s13, %s3624_s18  ;;  %p3630_p6 = scmp.lt.s32.totalorder %s3624_s18, %s3624_s18 }
 0x5d6   :  { %p3631_p7 = por %p3630_p6, %p3629_p5 }
 0x5d8   :  { %p3632_p8 = pnand %p3631_p7, %p3625_p4 }
 0x5da   :  { %3635 = shalt.err (!%p3632_p8)
}
 0x5db   :  { %s3636_s10 = scalar_lea.hbm %s4338_s17, 128 }
 0x5dc   :  { %p3637_p9 = scmp.ne.s32.totalorder %s4338_s17, %s3636_s10  ;;  %p3640_p10 = scmp.lt.u32.totalorder %s3636_s10, %s4338_s17 }
 0x5de   :  { %p3642_p11 = pnand %p3640_p10, %p3637_p9 }
 0x5e0   :  { %3645 = shalt.err (!%p3642_p11)
}
 0x5e1   :  { %2683 = dma.vmem_to_hbm [thread:$0]  %s2681_s13, 128, %s4338_s17, [#allocation21]   ;;  %v2890_v13 = vld [vmem:[#allocation17] ss:$0 sm:$0xff] }
 0x5e2   :  { %s3706_s25 = smov [#allocation19]  }
 0x5e3   :  { %s2660_s4 = sshll.u32 %s3706_s25, 4  ;;  %s2661_s4 = int_to_ptr.vmem [resolvable:$true] %s2660_s4 }
 0x5e4   :  { %s3646_s11 = scalar_lea.vmem %s2661_s4, 128  ;;  %p3651_p13 = scmp.lt.s32.totalorder %s2661_s4, %s2661_s4 }
 0x5e5   :  { %p3647_p12 = scmp.ne.s32.totalorder %s2661_s4, %s3646_s11  ;;  %p3652_p0 = scmp.lt.s32.totalorder %s3646_s11, %s3646_s11 }
 0x5e7   :  { %p3653_p1 = por %p3652_p0, %p3651_p13 }
 0x5e9   :  { %p3654_p2 = pnand %p3653_p1, %p3647_p12 }
 0x69b   :  { %v2646_v14 = vpop.f32.mrb[12].mxu0 }
 0x69c   :  { %v2647_v23 = vadd.f32 %v2890_v13, %v2646_v14  ;;  %v2977_v59 = vpop.f32.mrb[13].mxu0 }
 0x69d   :  { %v2649_v40 = vpop.f32.mrb[14].mxu0 }
 0x69e   :  { %3380 = vtanh.f32 %v2647_v23  ;;  %v2978_v44 = vpop.f32.mrb[15].mxu0 }
 0x6a8   :  { %v3381_v53 = vpop.eup %3380 }
 0x6a9   :  { %2653 = vst [vmem:[#allocation19] sm:$0xff] %v3381_v53 }
 0x6aa   :  { %3657 = shalt.err (!%p3654_p2)
}
 0x6ab   :  { %s3658_s28 = scalar_lea.hbm %s4336_s15, 128 }
 0x6ac   :  { %p3659_p3 = scmp.ne.s32.totalorder %s4336_s15, %s3658_s28  ;;  %p3662_p4 = scmp.lt.u32.totalorder %s3658_s28, %s4336_s15 }
 0x6ae   :  { %p3664_p5 = pnand %p3662_p4, %p3659_p3 }
 0x6b0   :  { %3667 = shalt.err (!%p3664_p5)
}
 0x6b1   :  { %2663 = dma.vmem_to_hbm [thread:$0]  %s2661_s4, 128, %s4336_s15, [#allocation4]  }
 0x6b2   :  { %3680 = dma.done.wait [#allocation4], 128  }
 0x6b3   :  { %3681 = vsyncadd [#allocation4], 4294967168 }
 0x6b4   :  { %3682 = dma.done.wait [#allocation21], 256  }
 0x6b5   :  { %3683 = vsyncadd [#allocation21], 4294967040 }
 0x6b6   :  { %2693 = vsyncpa [#allocation3], 1 }
 0x6b7   :  { %2694 = vsyncpa [#allocation6], 1 }
 0x6b8   :  { %2695 = vsyncpa [#allocation9], 1 }
 0x6b9   :  { %2696 = vsyncpa [#allocation12], 1 }
 0x6ba   :  { %2697 = vsyncpa [#allocation15], 1 }
 0x6bb   :  { %2698 = vsyncpa [#allocation18], 1 }
 0x6bc   :  { %2699 = vsyncpa [#allocation4], 1 }
 0x6bd   :  { %2700 = vsyncpa [#allocation21], 1 }

</bundles_post_ra>
